<compile_context>
chip_gen: v7x
topology: tpu7x:2x2x1
jax: 0.10.0
libtpu: 0.0.40
codegen_flags: <defaults>
</compile_context>

<pallas_src>
import functools

import jax
import jax.numpy as jnp
import numpy as np
from jax import lax
from jax.experimental import pallas as pl
from jax.experimental.pallas import tpu as pltpu

J = 22
IN_DIM = J * 3            # 66
OUT_DIM = J * 6           # 132
HIDDEN = (512, 256, 256)

IN_PAD = 128              # 66 -> 128 (lane-dense K for the first matmul)
COMP = 128                # lanes per ortho6d component group (vreg aligned)
LAST_PAD = 6 * COMP       # 768: last-layer output [x1|x2|x3|y1|y2|y3] groups
ROT_DIM = 9 * J           # 198 real output lanes (joint-major 3x3 matrices)
OUT_COMPACT = 256         # 198 rounded up to a lane-dense width


def _round_up(a, b):
    return (a + b - 1) // b * b


def _pick_batch_tile(B):
    # >=2 grid steps when B > 16 (v7x dual-TC sharding + writeback/compute
    # overlap on single-TC chips); multiple of 16 (bf16-native sublane tile);
    # capped at 512 rows so all VMEM intermediates stay well under 32 MB.
    tb = _round_up(max((B + 1) // 2, 16), 16)
    return min(tb, 512)


# ----------------------------------------------------------------------------
# Fused kernel: MLP (bf16 MXU, f32 accumulate) + ortho6d epilogue + in-kernel
# output compaction via a constant selection matmul.
# ----------------------------------------------------------------------------
def _fused_kernel(x_ref, w1, b1, w2, b2, w3, b3, w4, b4, sel, o_ref):
    f32 = jnp.float32
    h = jnp.dot(x_ref[...], w1[...], preferred_element_type=f32) + b1[...]
    h = jnp.maximum(h, 0.0)
    h = jnp.dot(h.astype(jnp.bfloat16), w2[...], preferred_element_type=f32) + b2[...]
    h = jnp.maximum(h, 0.0)
    h = jnp.dot(h.astype(jnp.bfloat16), w3[...], preferred_element_type=f32) + b3[...]
    h = jnp.maximum(h, 0.0)
    h = jnp.dot(h.astype(jnp.bfloat16), w4[...], preferred_element_type=f32) + b4[...]
    # h: (tb, 768) f32, six 128-lane-aligned component groups (only lanes 0..21
    # of each group are real joints; padded lanes are exact zeros -> finite junk
    # that the selection matmul drops anyway).
    x1 = h[:, 0 * COMP:1 * COMP]
    x2 = h[:, 1 * COMP:2 * COMP]
    x3 = h[:, 2 * COMP:3 * COMP]
    y1 = h[:, 3 * COMP:4 * COMP]
    y2 = h[:, 4 * COMP:5 * COMP]
    y3 = h[:, 5 * COMP:6 * COMP]

    eps2 = jnp.float32(1e-16)  # == (1e-8)^2, matches max(norm, 1e-8) clamp
    # x = normalize(x_raw)
    inv_xn = lax.rsqrt(jnp.maximum(x1 * x1 + x2 * x2 + x3 * x3, eps2))
    x1 = x1 * inv_xn
    x2 = x2 * inv_xn
    x3 = x3 * inv_xn
    # z = normalize(cross(x, y_raw))
    z1 = x2 * y3 - x3 * y2
    z2 = x3 * y1 - x1 * y3
    z3 = x1 * y2 - x2 * y1
    inv_zn = lax.rsqrt(jnp.maximum(z1 * z1 + z2 * z2 + z3 * z3, eps2))
    z1 = z1 * inv_zn
    z2 = z2 * inv_zn
    z3 = z3 * inv_zn
    # y = cross(z, x)
    yy1 = z2 * x3 - z3 * x2
    yy2 = z3 * x1 - z1 * x3
    yy3 = z1 * x2 - z2 * x1

    # Nine 128-lane groups in row-major (r, c) order with columns [x, y, z]:
    # group g = 3*r + c.  A constant 0/1 selection matmul on the (idle) MXU
    # gathers lane j of group g into dense output lane j*9 + g, i.e. a
    # joint-major (tb, 198)-in-256 tile -- no padded HBM write, no post-kernel
    # transpose.  Values pass through bf16 exactly once (the cast below), so
    # storing bf16 is lossless relative to the matmul result.
    comps = (x1, yy1, z1, x2, yy2, z2, x3, yy3, z3)
    m = jnp.concatenate([c.astype(jnp.bfloat16) for c in comps], axis=1)
    o_ref[...] = jnp.dot(m, sel[...],
                         preferred_element_type=f32).astype(o_ref.dtype)


def _const_spec(shape):
    nd = len(shape)
    return pl.BlockSpec(shape, lambda i, _nd=nd: (0,) * _nd)


def fused_forward(x, prepped):
    """x: [B, 66] f32 raw (un-centered) positions.  prepped: prepared weights.
    Returns rotation matrices [B, J, 3, 3] f32."""
    B = x.shape[0]
    tb = _pick_batch_tile(B)
    B_pad = _round_up(B, tb)

    # Single cheap bf16 pad (batch to tile multiple, features 66 -> 128).
    xp = jnp.pad(x.astype(jnp.bfloat16),
                 ((0, B_pad - B), (0, IN_PAD - IN_DIM)))

    args = (xp,) + tuple(prepped)
    in_specs = [pl.BlockSpec((tb, IN_PAD), lambda i: (i, 0))]
    for a in prepped:
        in_specs.append(_const_spec(a.shape))

    out = pl.pallas_call(
        _fused_kernel,
        out_shape=jax.ShapeDtypeStruct((B_pad, OUT_COMPACT), jnp.bfloat16),
        grid=(B_pad // tb,),
        in_specs=in_specs,
        out_specs=pl.BlockSpec((tb, OUT_COMPACT), lambda i: (i, 0)),
        compiler_params=pltpu.CompilerParams(
            dimension_semantics=("parallel",),
            vmem_limit_bytes=32 * 1024 * 1024),
    )(*args)

    # Output is already dense & joint-major: just slice / reshape / upcast.
    return out[:B, :ROT_DIM].astype(jnp.float32).reshape(B, J, 3, 3)


# ----------------------------------------------------------------------------
# Host-side (one-time) parameter preparation.
# ----------------------------------------------------------------------------
def fold_zero_root(params):
    """Fold the (linear) root subtraction into the first layer weights:
    w1_eff[(0,c),:] = w1[(0,c),:] - sum_j w1[(j,c),:]  (exact in infinite
    precision; f32 here)."""
    w1, b1 = params[0]
    w1j = w1.reshape(J, 3, w1.shape[1])
    corr = w1j.sum(axis=0)                       # (3, 512)
    w1_eff = w1j.at[0].add(-corr).reshape(IN_DIM, w1.shape[1])
    return [(w1_eff, b1)] + list(params[1:])


def prepare_params(params):
    """Pad K to 128, permute last layer to component-major 128-lane groups,
    build the 0/1 compaction matrix, cast matmul operands to bf16."""
    (w1, b1), (w2, b2), (w3, b3), (w4, b4) = params

    w1p = jnp.zeros((IN_PAD, HIDDEN[0]), jnp.float32)
    w1p = w1p.at[:IN_DIM].set(w1).astype(jnp.bfloat16)

    # new column c*128 + j  <-  old column j*6 + c   (c: component, j: joint)
    src = (np.arange(J)[None, :] * 6 + np.arange(6)[:, None]).reshape(-1)
    dst = (np.arange(6)[:, None] * COMP + np.arange(J)[None, :]).reshape(-1)
    w4p = jnp.zeros((HIDDEN[2], LAST_PAD), jnp.float32)
    w4p = w4p.at[:, dst].set(w4[:, src]).astype(jnp.bfloat16)
    b4p = jnp.zeros((1, LAST_PAD), jnp.float32)
    b4p = b4p.at[:, dst].set(b4[:, src])

    # Selection matrix: row g*128 + j -> column j*9 + g (joint-major 3x3).
    selmat = np.zeros((9 * COMP, OUT_COMPACT), np.float32)
    g = np.arange(9)[:, None]
    j = np.arange(J)[None, :]
    selmat[(g * COMP + j).reshape(-1), (j * 9 + g).reshape(-1)] = 1.0

    return (w1p, b1,
            w2.astype(jnp.bfloat16), b2,
            w3.astype(jnp.bfloat16), b3,
            w4p, b4p,
            jnp.asarray(selmat, jnp.bfloat16))


def prepare_model(params, configs):
    p = fold_zero_root(params) if configs.get('zero_root', False) else params
    return prepare_params(p)


# ----------------------------------------------------------------------------
# Full model forward
# ----------------------------------------------------------------------------
def init_params(key):
    dims = (IN_DIM,) + HIDDEN + (OUT_DIM,)
    params = []
    for i, (din, dout) in enumerate(zip(dims[:-1], dims[1:])):
        kw, kb = jax.random.split(jax.random.fold_in(key, i))
        bound = 1.0 / np.sqrt(din)
        w = jax.random.uniform(kw, (din, dout), jnp.float32, -bound, bound)
        b = jax.random.uniform(kb, (1, dout), jnp.float32, -bound, bound)
        params.append((w, b))
    return params


def mixamo_bvh_forward(input_position, prepped, configs):
    # zero_root is folded into the prepared first-layer weights, so there is
    # no explicit root subtraction here.
    B = input_position.shape[0]
    x = input_position.reshape(B, IN_DIM)
    rot = fused_forward(x, prepped)                 # fused Pallas kernel
    if configs.get('rel_rot', False):
        # TODO(synk): get_global_bvh_rotations_torch needs the skeleton parent
        # hierarchy (not defined in the module); rel_rot=False path implemented.
        raise NotImplementedError
    return rot


# ----------------------------------------------------------------------------
# Pure-JAX references for verification
# ----------------------------------------------------------------------------
def _ortho6d_to_matrix(p):
    """p: (N, 6) -> (N, 3, 3), columns [x, y, z] (Zhou et al.)."""
    xr, yr = p[:, 0:3], p[:, 3:6]

    def norm(v):
        return v / jnp.maximum(jnp.linalg.norm(v, axis=-1, keepdims=True), 1e-8)

    x = norm(xr)
    z = norm(jnp.cross(x, yr))
    y = jnp.cross(z, x)
    return jnp.stack([x, y, z], axis=-1)


def ref_forward_f32(pos, params, zero_root):
    """Module-faithful f32 forward (explicit root subtraction)."""
    if zero_root:
        pos = pos - pos[:, :1, :]
    h = pos.reshape(pos.shape[0], IN_DIM)
    n = len(params)
    for i, (w, b) in enumerate(params):
        h = jnp.dot(h, w, precision=lax.Precision.HIGHEST) + b
        if i < n - 1:
            h = jnp.maximum(h, 0.0)
    return _ortho6d_to_matrix(h.reshape(-1, 6)).reshape(pos.shape[0], J, 3, 3)


def ref_forward_bf16(pos, folded_params):
    """Mirrors the kernel numerics: folded weights, bf16 matmul operands with
    f32 accumulation, f32 epilogue."""
    h = pos.reshape(pos.shape[0], IN_DIM).astype(jnp.bfloat16)
    n = len(folded_params)
    for i, (w, b) in enumerate(folded_params):
        h = jnp.dot(h, w.astype(jnp.bfloat16),
                    preferred_element_type=jnp.float32) + b
        if i < n - 1:
            h = jnp.maximum(h, 0.0).astype(jnp.bfloat16)
    return _ortho6d_to_matrix(h.reshape(-1, 6)).reshape(pos.shape[0], J, 3, 3)


if __name__ == "__main__":
    configs = {'network': 'simple', 'zero_root': True, 'rel_rot': False}
    key = jax.random.PRNGKey(0)
    kpos, kpar = jax.random.split(key)

    B = 32   # small, but >16 so the demo exercises a multi-step grid
    input_position = jax.random.normal(kpos, (B, J, 3), jnp.float32)
    params = init_params(kpar)
    folded = fold_zero_root(params)
    prepped = prepare_params(folded)

    fwd = jax.jit(functools.partial(mixamo_bvh_forward, configs=configs))
    out = jax.block_until_ready(fwd(input_position, prepped))

    # 1) zero_root folding is an exact linear identity (checked in f32).
    r_sub = ref_forward_f32(input_position, params, zero_root=True)
    r_fold = ref_forward_f32(input_position, folded, zero_root=False)
    np.testing.assert_allclose(np.asarray(r_sub), np.asarray(r_fold),
                               rtol=1e-4, atol=1e-4)

    # 2) Kernel matches the bf16-quantized reference on the folded weights.
    ref = ref_forward_bf16(input_position, folded)
    np.testing.assert_allclose(np.asarray(out), np.asarray(ref),
                               rtol=5e-3, atol=5e-3)

    assert out.shape == (B, J, 3, 3) and out.dtype == jnp.float32
    print("KERNEL_OK")
</pallas_src>

<mosaic_0001>
module attributes {stable_mosaic.version = 11 : i64} {
  func.func @_fused_kernel(%arg0: i32, %arg1: memref<16x128xbf16, #tpu.memory_space<vmem>>, %arg2: memref<128x512xbf16, #tpu.memory_space<vmem>>, %arg3: memref<1x512xf32, #tpu.memory_space<vmem>>, %arg4: memref<512x256xbf16, #tpu.memory_space<vmem>>, %arg5: memref<1x256xf32, #tpu.memory_space<vmem>>, %arg6: memref<256x256xbf16, #tpu.memory_space<vmem>>, %arg7: memref<1x256xf32, #tpu.memory_space<vmem>>, %arg8: memref<256x768xbf16, #tpu.memory_space<vmem>>, %arg9: memref<1x768xf32, #tpu.memory_space<vmem>>, %arg10: memref<1152x256xbf16, #tpu.memory_space<vmem>>, %arg11: memref<16x256xbf16, #tpu.memory_space<vmem>>) attributes {dimension_semantics = [#tpu.dimension_semantics<parallel>], iteration_bounds = array<i64: 2>, scalar_prefetch = 0 : i64, scratch_operands = 0 : i64, tpu.core_type = #tpu.core_type<tc>, window_params = [{transform_indices = @transform_0, window_bounds = array<i64: 16, 128>}, {pipeline_mode = #tpu.pipeline_mode<synchronous>, transform_indices = @transform_1, window_bounds = array<i64: 128, 512>}, {pipeline_mode = #tpu.pipeline_mode<synchronous>, transform_indices = @transform_2, window_bounds = array<i64: 1, 512>}, {pipeline_mode = #tpu.pipeline_mode<synchronous>, transform_indices = @transform_3, window_bounds = array<i64: 512, 256>}, {pipeline_mode = #tpu.pipeline_mode<synchronous>, transform_indices = @transform_4, window_bounds = array<i64: 1, 256>}, {pipeline_mode = #tpu.pipeline_mode<synchronous>, transform_indices = @transform_5, window_bounds = array<i64: 256, 256>}, {pipeline_mode = #tpu.pipeline_mode<synchronous>, transform_indices = @transform_6, window_bounds = array<i64: 1, 256>}, {pipeline_mode = #tpu.pipeline_mode<synchronous>, transform_indices = @transform_7, window_bounds = array<i64: 256, 768>}, {pipeline_mode = #tpu.pipeline_mode<synchronous>, transform_indices = @transform_8, window_bounds = array<i64: 1, 768>}, {pipeline_mode = #tpu.pipeline_mode<synchronous>, transform_indices = @transform_9, window_bounds = array<i64: 1152, 256>}, {transform_indices = @transform_10, window_bounds = array<i64: 16, 256>}]} {
    %c0 = arith.constant 0 : index
    %c0_0 = arith.constant 0 : index
    %0 = vector.load %arg1[%c0, %c0_0] : memref<16x128xbf16, #tpu.memory_space<vmem>>, vector<16x128xbf16>
    %c0_1 = arith.constant 0 : index
    %c0_2 = arith.constant 0 : index
    %1 = vector.load %arg2[%c0_1, %c0_2] : memref<128x512xbf16, #tpu.memory_space<vmem>>, vector<128x512xbf16>
    %cst = arith.constant dense<0.000000e+00> : vector<16x512xf32>
    %2 = tpu.matmul %0, %1, %cst {dimension_numbers = #tpu.dot_dimension_numbers<[1], [0], [0], [1], [0, 0, 1, 1], [], []>} : vector<16x128xbf16>, vector<128x512xbf16>, vector<16x512xf32> -> vector<16x512xf32>
    %c0_3 = arith.constant 0 : index
    %c0_4 = arith.constant 0 : index
    %3 = vector.load %arg3[%c0_3, %c0_4] : memref<1x512xf32, #tpu.memory_space<vmem>>, vector<1x512xf32>
    %4 = vector.broadcast %3 : vector<1x512xf32> to vector<16x512xf32>
    %5 = arith.addf %2, %4 : vector<16x512xf32>
    %cst_5 = arith.constant 0.000000e+00 : f32
    %6 = vector.broadcast %cst_5 : f32 to vector<16x512xf32>
    %7 = arith.maximumf %5, %6 : vector<16x512xf32>
    %8 = arith.truncf %7 : vector<16x512xf32> to vector<16x512xbf16>
    %c0_6 = arith.constant 0 : index
    %c0_7 = arith.constant 0 : index
    %9 = vector.load %arg4[%c0_6, %c0_7] : memref<512x256xbf16, #tpu.memory_space<vmem>>, vector<512x256xbf16>
    %cst_8 = arith.constant dense<0.000000e+00> : vector<16x256xf32>
    %10 = tpu.matmul %8, %9, %cst_8 {dimension_numbers = #tpu.dot_dimension_numbers<[1], [0], [0], [1], [0, 0, 1, 1], [], []>} : vector<16x512xbf16>, vector<512x256xbf16>, vector<16x256xf32> -> vector<16x256xf32>
    %c0_9 = arith.constant 0 : index
    %c0_10 = arith.constant 0 : index
    %11 = vector.load %arg5[%c0_9, %c0_10] : memref<1x256xf32, #tpu.memory_space<vmem>>, vector<1x256xf32>
    %12 = vector.broadcast %11 : vector<1x256xf32> to vector<16x256xf32>
    %13 = arith.addf %10, %12 : vector<16x256xf32>
    %cst_11 = arith.constant 0.000000e+00 : f32
    %14 = vector.broadcast %cst_11 : f32 to vector<16x256xf32>
    %15 = arith.maximumf %13, %14 : vector<16x256xf32>
    %16 = arith.truncf %15 : vector<16x256xf32> to vector<16x256xbf16>
    %c0_12 = arith.constant 0 : index
    %c0_13 = arith.constant 0 : index
    %17 = vector.load %arg6[%c0_12, %c0_13] : memref<256x256xbf16, #tpu.memory_space<vmem>>, vector<256x256xbf16>
    %cst_14 = arith.constant dense<0.000000e+00> : vector<16x256xf32>
    %18 = tpu.matmul %16, %17, %cst_14 {dimension_numbers = #tpu.dot_dimension_numbers<[1], [0], [0], [1], [0, 0, 1, 1], [], []>} : vector<16x256xbf16>, vector<256x256xbf16>, vector<16x256xf32> -> vector<16x256xf32>
    %c0_15 = arith.constant 0 : index
    %c0_16 = arith.constant 0 : index
    %19 = vector.load %arg7[%c0_15, %c0_16] : memref<1x256xf32, #tpu.memory_space<vmem>>, vector<1x256xf32>
    %20 = vector.broadcast %19 : vector<1x256xf32> to vector<16x256xf32>
    %21 = arith.addf %18, %20 : vector<16x256xf32>
    %cst_17 = arith.constant 0.000000e+00 : f32
    %22 = vector.broadcast %cst_17 : f32 to vector<16x256xf32>
    %23 = arith.maximumf %21, %22 : vector<16x256xf32>
    %24 = arith.truncf %23 : vector<16x256xf32> to vector<16x256xbf16>
    %c0_18 = arith.constant 0 : index
    %c0_19 = arith.constant 0 : index
    %25 = vector.load %arg8[%c0_18, %c0_19] : memref<256x768xbf16, #tpu.memory_space<vmem>>, vector<256x768xbf16>
    %cst_20 = arith.constant dense<0.000000e+00> : vector<16x768xf32>
    %26 = tpu.matmul %24, %25, %cst_20 {dimension_numbers = #tpu.dot_dimension_numbers<[1], [0], [0], [1], [0, 0, 1, 1], [], []>} : vector<16x256xbf16>, vector<256x768xbf16>, vector<16x768xf32> -> vector<16x768xf32>
    %c0_21 = arith.constant 0 : index
    %c0_22 = arith.constant 0 : index
    %27 = vector.load %arg9[%c0_21, %c0_22] : memref<1x768xf32, #tpu.memory_space<vmem>>, vector<1x768xf32>
    %28 = vector.broadcast %27 : vector<1x768xf32> to vector<16x768xf32>
    %29 = arith.addf %26, %28 : vector<16x768xf32>
    %30 = vector.extract_strided_slice %29 {offsets = [0, 0], sizes = [16, 128], strides = [1, 1]} : vector<16x768xf32> to vector<16x128xf32>
    %31 = vector.extract_strided_slice %29 {offsets = [0, 128], sizes = [16, 128], strides = [1, 1]} : vector<16x768xf32> to vector<16x128xf32>
    %32 = vector.extract_strided_slice %29 {offsets = [0, 256], sizes = [16, 128], strides = [1, 1]} : vector<16x768xf32> to vector<16x128xf32>
    %33 = vector.extract_strided_slice %29 {offsets = [0, 384], sizes = [16, 128], strides = [1, 1]} : vector<16x768xf32> to vector<16x128xf32>
    %34 = vector.extract_strided_slice %29 {offsets = [0, 512], sizes = [16, 128], strides = [1, 1]} : vector<16x768xf32> to vector<16x128xf32>
    %35 = vector.extract_strided_slice %29 {offsets = [0, 640], sizes = [16, 128], strides = [1, 1]} : vector<16x768xf32> to vector<16x128xf32>
    %36 = arith.mulf %30, %30 : vector<16x128xf32>
    %37 = arith.mulf %31, %31 : vector<16x128xf32>
    %38 = arith.addf %36, %37 : vector<16x128xf32>
    %39 = arith.mulf %32, %32 : vector<16x128xf32>
    %40 = arith.addf %38, %39 : vector<16x128xf32>
    %cst_23 = arith.constant 1.000000e-16 : f32
    %41 = vector.broadcast %cst_23 : f32 to vector<16x128xf32>
    %42 = arith.maximumf %40, %41 : vector<16x128xf32>
    %43 = math.rsqrt %42 : vector<16x128xf32>
    %44 = arith.mulf %30, %43 : vector<16x128xf32>
    %45 = arith.mulf %31, %43 : vector<16x128xf32>
    %46 = arith.mulf %32, %43 : vector<16x128xf32>
    %47 = arith.mulf %45, %35 : vector<16x128xf32>
    %48 = arith.mulf %46, %34 : vector<16x128xf32>
    %49 = arith.subf %47, %48 : vector<16x128xf32>
    %50 = arith.mulf %46, %33 : vector<16x128xf32>
    %51 = arith.mulf %44, %35 : vector<16x128xf32>
    %52 = arith.subf %50, %51 : vector<16x128xf32>
    %53 = arith.mulf %44, %34 : vector<16x128xf32>
    %54 = arith.mulf %45, %33 : vector<16x128xf32>
    %55 = arith.subf %53, %54 : vector<16x128xf32>
    %56 = arith.mulf %49, %49 : vector<16x128xf32>
    %57 = arith.mulf %52, %52 : vector<16x128xf32>
    %58 = arith.addf %56, %57 : vector<16x128xf32>
    %59 = arith.mulf %55, %55 : vector<16x128xf32>
    %60 = arith.addf %58, %59 : vector<16x128xf32>
    %cst_24 = arith.constant 1.000000e-16 : f32
    %61 = vector.broadcast %cst_24 : f32 to vector<16x128xf32>
    %62 = arith.maximumf %60, %61 : vector<16x128xf32>
    %63 = math.rsqrt %62 : vector<16x128xf32>
    %64 = arith.mulf %49, %63 : vector<16x128xf32>
    %65 = arith.mulf %52, %63 : vector<16x128xf32>
    %66 = arith.mulf %55, %63 : vector<16x128xf32>
    %67 = arith.mulf %65, %46 : vector<16x128xf32>
    %68 = arith.mulf %66, %45 : vector<16x128xf32>
    %69 = arith.subf %67, %68 : vector<16x128xf32>
    %70 = arith.mulf %66, %44 : vector<16x128xf32>
    %71 = arith.mulf %64, %46 : vector<16x128xf32>
    %72 = arith.subf %70, %71 : vector<16x128xf32>
    %73 = arith.mulf %64, %45 : vector<16x128xf32>
    %74 = arith.mulf %65, %44 : vector<16x128xf32>
    %75 = arith.subf %73, %74 : vector<16x128xf32>
    %76 = arith.truncf %44 : vector<16x128xf32> to vector<16x128xbf16>
    %77 = arith.truncf %69 : vector<16x128xf32> to vector<16x128xbf16>
    %78 = arith.truncf %64 : vector<16x128xf32> to vector<16x128xbf16>
    %79 = arith.truncf %45 : vector<16x128xf32> to vector<16x128xbf16>
    %80 = arith.truncf %72 : vector<16x128xf32> to vector<16x128xbf16>
    %81 = arith.truncf %65 : vector<16x128xf32> to vector<16x128xbf16>
    %82 = arith.truncf %46 : vector<16x128xf32> to vector<16x128xbf16>
    %83 = arith.truncf %75 : vector<16x128xf32> to vector<16x128xbf16>
    %84 = arith.truncf %66 : vector<16x128xf32> to vector<16x128xbf16>
    %85 = tpu.concatenate %76, %77, %78, %79, %80, %81, %82, %83, %84 in 1 : vector<16x128xbf16>, vector<16x128xbf16>, vector<16x128xbf16>, vector<16x128xbf16>, vector<16x128xbf16>, vector<16x128xbf16>, vector<16x128xbf16>, vector<16x128xbf16>, vector<16x128xbf16> -> vector<16x1152xbf16>
    %c0_25 = arith.constant 0 : index
    %c0_26 = arith.constant 0 : index
    %86 = vector.load %arg10[%c0_25, %c0_26] : memref<1152x256xbf16, #tpu.memory_space<vmem>>, vector<1152x256xbf16>
    %cst_27 = arith.constant dense<0.000000e+00> : vector<16x256xf32>
    %87 = tpu.matmul %85, %86, %cst_27 {dimension_numbers = #tpu.dot_dimension_numbers<[1], [0], [0], [1], [0, 0, 1, 1], [], []>} : vector<16x1152xbf16>, vector<1152x256xbf16>, vector<16x256xf32> -> vector<16x256xf32>
    %88 = arith.truncf %87 : vector<16x256xf32> to vector<16x256xbf16>
    %c0_28 = arith.constant 0 : index
    %c0_29 = arith.constant 0 : index
    %89 = vector.load %arg11[%c0_28, %c0_29] : memref<16x256xbf16, #tpu.memory_space<vmem>>, vector<16x256xbf16>
    tpu.vector_store %arg11[%c0_28, %c0_29], %88 {strides = array<i32>} : memref<16x256xbf16, #tpu.memory_space<vmem>>, vector<16x256xbf16>,
    return
  }
  func.func @transform_0(%arg0: i32) -> (i32, i32) {
    %c0_i32 = arith.constant 0 : i32
    %c0_i32_0 = arith.constant 0 : i32
    return %arg0, %c0_i32 : i32, i32
  }
  func.func @transform_1(%arg0: i32) -> (i32, i32) {
    %c0_i32 = arith.constant 0 : i32
    %c0_i32_0 = arith.constant 0 : i32
    %c0_i32_1 = arith.constant 0 : i32
    return %c0_i32, %c0_i32_0 : i32, i32
  }
  func.func @transform_2(%arg0: i32) -> (i32, i32) {
    %c0_i32 = arith.constant 0 : i32
    %c0_i32_0 = arith.constant 0 : i32
    %c0_i32_1 = arith.constant 0 : i32
    return %c0_i32, %c0_i32_0 : i32, i32
  }
  func.func @transform_3(%arg0: i32) -> (i32, i32) {
    %c0_i32 = arith.constant 0 : i32
    %c0_i32_0 = arith.constant 0 : i32
    %c0_i32_1 = arith.constant 0 : i32
    return %c0_i32, %c0_i32_0 : i32, i32
  }
  func.func @transform_4(%arg0: i32) -> (i32, i32) {
    %c0_i32 = arith.constant 0 : i32
    %c0_i32_0 = arith.constant 0 : i32
    %c0_i32_1 = arith.constant 0 : i32
    return %c0_i32, %c0_i32_0 : i32, i32
  }
  func.func @transform_5(%arg0: i32) -> (i32, i32) {
    %c0_i32 = arith.constant 0 : i32
    %c0_i32_0 = arith.constant 0 : i32
    %c0_i32_1 = arith.constant 0 : i32
    return %c0_i32, %c0_i32_0 : i32, i32
  }
  func.func @transform_6(%arg0: i32) -> (i32, i32) {
    %c0_i32 = arith.constant 0 : i32
    %c0_i32_0 = arith.constant 0 : i32
    %c0_i32_1 = arith.constant 0 : i32
    return %c0_i32, %c0_i32_0 : i32, i32
  }
  func.func @transform_7(%arg0: i32) -> (i32, i32) {
    %c0_i32 = arith.constant 0 : i32
    %c0_i32_0 = arith.constant 0 : i32
    %c0_i32_1 = arith.constant 0 : i32
    return %c0_i32, %c0_i32_0 : i32, i32
  }
  func.func @transform_8(%arg0: i32) -> (i32, i32) {
    %c0_i32 = arith.constant 0 : i32
    %c0_i32_0 = arith.constant 0 : i32
    %c0_i32_1 = arith.constant 0 : i32
    return %c0_i32, %c0_i32_0 : i32, i32
  }
  func.func @transform_9(%arg0: i32) -> (i32, i32) {
    %c0_i32 = arith.constant 0 : i32
    %c0_i32_0 = arith.constant 0 : i32
    %c0_i32_1 = arith.constant 0 : i32
    return %c0_i32, %c0_i32_0 : i32, i32
  }
  func.func @transform_10(%arg0: i32) -> (i32, i32) {
    %c0_i32 = arith.constant 0 : i32
    %c0_i32_0 = arith.constant 0 : i32
    return %arg0, %c0_i32 : i32, i32
  }
}

</mosaic_0001>

<bundles_post_ra>
// kernel: mixamo_bvh_forward.1
= control target key start
LH: loop header
LB: loop body
LE: loop exit
PB: predicated region body
PF: predicated region fallthrough
CT: control target
= control target key end

     0   :  { %15 = vsyncpa [#allocation3], 0  ;;  %s5126_s0 = inlined_call_operand.vmem [shape: bf16[32,128], index: 0, kind: input, shape index: {}]   ;;  %s5127_s1 = inlined_call_operand.vmem [shape: bf16[128,512], index: 1, kind: input, shape index: {}]   ;;  %s5128_s2 = inlined_call_operand.vmem [shape: f32[1,512], index: 2, kind: input, shape index: {}]   ;;  %s5129_s3 = inlined_call_operand.hbm [shape: bf16[512,256], index: 3, kind: input, shape index: {}]   ;;  %s5130_s4 = inlined_call_operand.vmem [shape: f32[1,256], index: 4, kind: input, shape index: {}]   ;;  %s5131_s5 = inlined_call_operand.hbm [shape: bf16[256,256], index: 5, kind: input, shape index: {}]   ;;  %s5132_s6 = inlined_call_operand.vmem [shape: f32[1,256], index: 6, kind: input, shape index: {}]   ;;  %s5133_s7 = inlined_call_operand.hbm [shape: bf16[256,768], index: 7, kind: input, shape index: {}]   ;;  %s5134_s8 = inlined_call_operand.vmem [shape: f32[1,768], index: 8, kind: input, shape index: {}]   ;;  %s5135_s9 = inlined_call_operand.hbm [shape: bf16[1152,256], index: 9, kind: input, shape index: {}]   ;;  %s5136_s10 = inlined_call_operand.vmem [shape: bf16[32,256], index: 10, kind: output, shape index: {}]  }
   0x1   :  { %16 = vsyncpa [#allocation5], 0 }
   0x2   :  { %17 = vsyncpa [#allocation8], 0  ;;  %s4729_s13 = smov 0  }
   0x3 LB: > { %s5137_s14 = sadd.s32 4294967295, %s4663_s13   ;;  %p3502_p0 = scmp.ge.s32.totalorder %s4663_s13, 1  ;;  %s4663_s13 = sphi %s4729_s13, %s23_s13  }
   0x4   : > { %p269_p1 = scmp.lt.s32.totalorder %s4663_s13, 3  ;;  %p4739_p2 = scmp.eq.s32.totalorder %s5137_s14, 0 }
   0x5   : > { %s4665_s17 = smov [#allocation4]   ;;  %s4666_s19 = smov [#allocation2]  }
   0x6   : > { %s5142_s15 = scalar_select %p4739_p2, 1, 0 }
   0x7   : > { %p4743_p3 = pnand %p3502_p0, %p269_p1  ;;  %s303_s18 = sshll.u32 %s4665_s17, 4  ;;  %s4747_s18 = int_to_ptr.vmem [resolvable:$true] %s303_s18 }
   0x8   : > { %s287_s20 = sshll.u32 %s4666_s19, 4  ;;  %s4667_s22 = smov [#allocation6]   ;;  %s4751_s20 = int_to_ptr.vmem [resolvable:$true] %s287_s20 }
   0x9   : > { %s5143_s16 = scalar_select %p4743_p3, 1, 0 }
   0xa   : > { %p3934_p4 = pneg %p4743_p3  ;;  %s319_s23 = sshll.u32 %s4667_s22, 4  ;;  %s4759_s23 = int_to_ptr.vmem [resolvable:$true] %s319_s23 }
   0xb   : > { %s4533_s26 = scalar_lea.hbm %s5131_s5, 4096 }
   0xc   : > { %p4755_p5 = pnand %p4739_p2, %p3934_p4  ;;  %p4534_p6 = scmp.ne.s32.totalorder %s5131_s5, %s4533_s26 }
   0xd   : > { %p4540_p10 = scmp.lt.u32.totalorder %s4533_s26, %s5131_s5 }
   0xe   : > { %p4769_p7 = pneg %p4755_p5 }
  0x10   : > { %p4536_p8 = pnand %p4769_p7, %p4534_p6 }
  0x12   : > { %p4537_p9 = pneg %p4536_p8 }
  0x14   : > { %p4542_p11 = pnand %p4540_p10, %p4537_p9 }
  0x16   : > { %4545 = shalt.err (!%p4542_p11)
}
  0x17   : > { %s4546_s12 = scalar_lea.vmem %s4747_s18, 4096  ;;  %p4554_p1 = scmp.lt.s32.totalorder %s4747_s18, %s4747_s18 }
  0x18   : > { %p4547_p12 = scmp.ne.s32.totalorder %s4747_s18, %s4546_s12  ;;  %p4555_p4 = scmp.lt.s32.totalorder %s4546_s12, %s4546_s12 }
  0x1a   : > { %p4549_p13 = pnand %p4547_p12, %p4769_p7  ;;  %p4556_p6 = por %p4555_p4, %p4554_p1 }
  0x1c   : > { %p4550_p0 = pneg %p4549_p13 }
  0x1e   : > { %p4557_p8 = pnand %p4556_p6, %p4550_p0 }
  0x20   : > { %4560 = shalt.err (!%p4557_p8)
}
  0x21   : > { %s5138_s17 = smov 128   ;;  %s4669_s19 = smov 8  }
  0x22   : > { %3940 = dma.hbm_to_vmem [thread:$0]  (!%p4755_p5), %s5131_s5, 4096, %s4747_s18, [#allocation5], %s5138_s17, %s5138_s17, %s4669_s19  }
  0x23   : > { %s4561_s27 = scalar_lea.hbm %s5129_s3, 8192 }
  0x24   : > { %p4562_p9 = scmp.ne.s32.totalorder %s5129_s3, %s4561_s27  ;;  %p4568_p12 = scmp.lt.u32.totalorder %s4561_s27, %s5129_s3 }
  0x26   : > { %p4564_p10 = pnand %p4562_p9, %p4769_p7 }
  0x28   : > { %p4565_p11 = pneg %p4564_p10 }
  0x2a   : > { %p4570_p13 = pnand %p4568_p12, %p4565_p11 }
  0x2c   : > { %4573 = shalt.err (!%p4570_p13)
}
  0x2d   : > { %s4574_s18 = scalar_lea.vmem %s4751_s20, 8192  ;;  %p4582_p6 = scmp.lt.s32.totalorder %s4751_s20, %s4751_s20 }
  0x2e   : > { %p4575_p0 = scmp.ne.s32.totalorder %s4751_s20, %s4574_s18  ;;  %p4583_p8 = scmp.lt.s32.totalorder %s4574_s18, %s4574_s18 }
  0x30   : > { %p4577_p1 = pnand %p4575_p0, %p4769_p7  ;;  %p4584_p9 = por %p4583_p8, %p4582_p6 }
  0x32   : > { %p4578_p4 = pneg %p4577_p1 }
  0x34   : > { %p4585_p10 = pnand %p4584_p9, %p4578_p4 }
  0x36   : > { %4588 = shalt.err (!%p4585_p10)
}
  0x37   : > { %3937 = dma.hbm_to_vmem [thread:$0]  (!%p4755_p5), %s5129_s3, 8192, %s4751_s20, [#allocation3], %s5138_s17, %s5138_s17, %s4669_s19  }
  0x38   : > { %s4589_s27 = scalar_lea.hbm %s5133_s7, 12288 }
  0x39   : > { %p4590_p11 = scmp.ne.s32.totalorder %s5133_s7, %s4589_s27  ;;  %p4596_p0 = scmp.lt.u32.totalorder %s4589_s27, %s5133_s7 }
  0x3b   : > { %p4592_p12 = pnand %p4590_p11, %p4769_p7 }
  0x3d   : > { %p4593_p13 = pneg %p4592_p12 }
  0x3f   : > { %p4598_p1 = pnand %p4596_p0, %p4593_p13 }
  0x41   : > { %4601 = shalt.err (!%p4598_p1)
}
  0x42   : > { %s4602_s20 = scalar_lea.vmem %s4759_s23, 12288  ;;  %p4610_p9 = scmp.lt.s32.totalorder %s4759_s23, %s4759_s23 }
  0x43   : > { %p4603_p4 = scmp.ne.s32.totalorder %s4759_s23, %s4602_s20  ;;  %p4611_p10 = scmp.lt.s32.totalorder %s4602_s20, %s4602_s20 }
  0x45   : > { %p4605_p6 = pnand %p4603_p4, %p4769_p7  ;;  %p4612_p11 = por %p4611_p10, %p4610_p9 }
  0x47   : > { %p4606_p8 = pneg %p4605_p6 }
  0x49   : > { %p4613_p12 = pnand %p4612_p11, %p4606_p8 }
  0x4b   : > { %4616 = shalt.err (!%p4613_p12)
}
  0x4c   : > { %s4670_s18 = smov 384   ;;  %s4671_s22 = smov 24  }
  0x4d   : > { %3943 = dma.hbm_to_vmem [thread:$0]  (!%p4755_p5), %s5133_s7, 12288, %s4759_s23, [#allocation5], %s4670_s18, %s4670_s18, %s4671_s22  }
  0x4e   : > { %s4672_s26 = smov [#allocation7]   ;;  %s4617_s11 = scalar_lea.hbm %s5135_s9, 18432 }
  0x4f   : > { %s335_s27 = sshll.u32 %s4672_s26, 4  ;;  %p4618_p13 = scmp.ne.s32.totalorder %s5135_s9, %s4617_s11  ;;  %s336_s27 = int_to_ptr.vmem [resolvable:$true] %s335_s27 }
  0x50   : > { %p4624_p4 = scmp.lt.u32.totalorder %s4617_s11, %s5135_s9 }
  0x51   : > { %p4620_p0 = pnand %p4618_p13, %p4769_p7 }
  0x53   : > { %p4621_p1 = pneg %p4620_p0 }
  0x55   : > { %p4626_p6 = pnand %p4624_p4, %p4621_p1 }
  0x57   : > { %4629 = shalt.err (!%p4626_p6)
}
  0x58   : > { %s4630_s23 = scalar_lea.vmem %s336_s27, 18432  ;;  %p4638_p11 = scmp.lt.s32.totalorder %s336_s27, %s336_s27 }
  0x59   : > { %p4631_p8 = scmp.ne.s32.totalorder %s336_s27, %s4630_s23  ;;  %p4639_p12 = scmp.lt.s32.totalorder %s4630_s23, %s4630_s23 }
  0x5b   : > { %p4633_p9 = pnand %p4631_p8, %p4769_p7  ;;  %p4640_p2 = por %p4639_p12, %p4638_p11 }
  0x5d   : > { %p4634_p10 = pneg %p4633_p9 }
  0x5f   : > { %p4641_p3 = pnand %p4640_p2, %p4634_p10 }
  0x61   : > { %4644 = shalt.err (!%p4641_p3)
}
  0x62   : > { %s5146_s18 = smov 128   ;;  %p5147_p13 = scmp.ne.s32.totalorder %s5143_s16, 0 }
  0x63   : > { %3946 = dma.hbm_to_vmem [thread:$0]  (!%p4755_p5), %s5135_s9, 18432, %s336_s27, [#allocation8], %s5146_s18, %s5146_s18, %s4669_s19  }
  0x64   : > { %360 = sbr.rel (%p5147_p13) target bundleno = 1631 (0x65f), region = 60  ;;  %p5148_p7 = scmp.ne.s32.totalorder (!%p5147_p13), %s5142_s15, 0 }
  0x6b   : > { %4650 = dma.done.wait (%p5148_p7), [#allocation3], 8192  }
  0x6c   : > { %4652 = vsyncadd (%p5148_p7), [#allocation3], 4294959104 }
  0x6d   : > { %4654 = dma.done.wait (%p5148_p7), [#allocation5], 16384  }
  0x6e   : > { %4656 = vsyncadd (%p5148_p7), [#allocation5], 4294950912 }
  0x6f   : > { %4658 = dma.done.wait (%p5148_p7), [#allocation8], 18432  }
  0x70   : > { %4660 = vsyncadd (%p5148_p7), [#allocation8], 4294948864  ;;  %v4673_v0 = vmov 0   ;;  %s5149_s16 = sadd.s32 4294967295, %s4663_s13   ;;  %v3972_v1 = vld [vmem:[%s5127_s1 + $0x4] ss:$16 sps:$4 sm:$0xff]  }
  0x71   : > { %679 = vmatprep.mubr.bf16.mxu0 %v4673_v0  ;;  %722 = vmatprep.mubr.bf16.mxu1 %v4673_v0  ;;  %s3513_s21 = sshll.u32 %s5149_s16, 1  ;;  %v3974_v2 = vld [vmem:[%s5127_s1] ss:$16 sps:$4 sm:$0xff]   ;;  %v3975_v3 = vld [vmem:[%s5127_s1 + $0x24] ss:$16 sps:$4 sm:$0xff]  }
  0x72   : > { %p412_p2 = scmp.lt.s32.totalorder %s3513_s21, 3  ;;  %647 = vmatprep.subr.bf16.mxu0 %v3972_v1  ;;  %v3977_v4 = vld [vmem:[%s5127_s1 + $0x20] ss:$16 sps:$4 sm:$0xff]   ;;  %v3978_v5 = vld [vmem:[%s5127_s1 + $0x44] ss:$16 sps:$4 sm:$0xff]  }
  0x73   : > { %648 = vmatpush1.bf16.msra.mxu0 %v3974_v2  ;;  %v3980_v6 = vld [vmem:[%s5127_s1 + $0x40] ss:$16 sps:$4 sm:$0xff]   ;;  %v3981_v7 = vld [vmem:[%s5127_s1 + $0x64] ss:$16 sps:$4 sm:$0xff]   ;;  %v3997_v10 = vld [vmem:[%s5127_s1 + $0xc] ss:$16 sps:$4 sm:$0xff]  }
  0x74   : > { %s5151_s21 = smov (!%p412_p2, %s3513_s21), 3  ;;  %649 = vmatprep.subr.bf16.mxu0 %v3975_v3  ;;  %v3983_v8 = vld [vmem:[%s5127_s1 + $0x60] ss:$16 sps:$4 sm:$0xff]   ;;  %v3984_v9 = vld [vmem:[%s5127_s1 + $0x84] ss:$16 sps:$4 sm:$0xff]   ;;  %690 = vmatprep.subr.bf16.mxu1 %v3997_v10 }
  0x75   : > { %s3514_s11 = sshll.u32 %s5151_s21, 2  ;;  %v3999_v11 = vld [vmem:[%s5127_s1 + $0x8] ss:$16 sps:$4 sm:$0xff]   ;;  %v4000_v12 = vld [vmem:[%s5127_s1 + $0x2c] ss:$16 sps:$4 sm:$0xff]   ;;  %s3891_s26 = sshll.u32 %s5151_s21, 3 }
  0x76   : > { %s4908_s16 = scalar_lea.vmem %s5126_s0, %s3514_s11  ;;  %v3986_v13 = vld [vmem:[%s5127_s1 + $0x80] ss:$16 sps:$4 sm:$0xff]   ;;  %691 = vmatpush1.bf16.msra.mxu1 %v3999_v11  ;;  %v4002_v14 = vld [vmem:[%s5127_s1 + $0x28] ss:$16 sps:$4 sm:$0xff]   ;;  %v3987_v15 = vld [vmem:[%s5127_s1 + $0xa4] ss:$16 sps:$4 sm:$0xff]   ;;  %s422_s30 = scalar_lea.vmem %s5136_s10, %s3891_s26 }
  0x77   : > { %650 = vmatpush1.bf16.msra.mxu0 %v3977_v4  ;;  %692 = vmatprep.subr.bf16.mxu1 %v4000_v12  ;;  %v4003_v16 = vld [vmem:[%s5127_s1 + $0x4c] ss:$16 sps:$4 sm:$0xff]   ;;  %v3989_v17 = vld [vmem:[%s5127_s1 + $0xa0] ss:$16 sps:$4 sm:$0xff]   ;;  %v4005_v18 = vld [vmem:[%s5127_s1 + $0x48] ss:$16 sps:$4 sm:$0xff]   ;;  %v461_v4 = vlaneseq }
  0x78   : > { %651 = vmatprep.subr.bf16.mxu0 %v3978_v5  ;;  %v3990_v19 = vld [vmem:[%s5127_s1 + $0xc4] ss:$16 sps:$4 sm:$0xff]   ;;  %v4006_v20 = vld [vmem:[%s5127_s1 + $0x6c] ss:$16 sps:$4 sm:$0xff]   ;;  %v3992_v21 = vld [vmem:[%s5127_s1 + $0xc0] ss:$16 sps:$4 sm:$0xff]  }
  0x79   : > { %v4008_v22 = vld [vmem:[%s5127_s1 + $0x68] ss:$16 sps:$4 sm:$0xff]   ;;  %v3993_v23 = vld [vmem:[%s5127_s1 + $0xe4] ss:$16 sps:$4 sm:$0xff]   ;;  %v4009_v24 = vld [vmem:[%s5127_s1 + $0x8c] ss:$16 sps:$4 sm:$0xff]  }
  0x7a   : > { %693 = vmatpush1.bf16.msra.mxu1 %v4002_v14  ;;  %v3995_v25 = vld [vmem:[%s5127_s1 + $0xe0] ss:$16 sps:$4 sm:$0xff]   ;;  %v4011_v26 = vld [vmem:[%s5127_s1 + $0x88] ss:$16 sps:$4 sm:$0xff]   ;;  %v4012_v27 = vld [vmem:[%s5127_s1 + $0xac] ss:$16 sps:$4 sm:$0xff]  }
  0x7b   : > { %652 = vmatpush1.bf16.msra.mxu0 %v3980_v6  ;;  %694 = vmatprep.subr.bf16.mxu1 %v4003_v16  ;;  %v3996_v28 = vld [vmem:[%s4908_s16] sm:$0xff]   ;;  %v4014_v29 = vld [vmem:[%s5127_s1 + $0xa8] ss:$16 sps:$4 sm:$0xff]   ;;  %v4015_v30 = vld [vmem:[%s5127_s1 + $0xcc] ss:$16 sps:$4 sm:$0xff]   ;;  %v4986_v5 = vshrl.u32 %v461_v4, 7 }
  0x7c   : > { %653 = vmatprep.subr.bf16.mxu0 %v3981_v7  ;;  %v4017_v31 = vld [vmem:[%s5127_s1 + $0xc8] ss:$16 sps:$4 sm:$0xff]   ;;  %v4018_v32 = vld [vmem:[%s5127_s1 + $0xec] ss:$16 sps:$4 sm:$0xff]   ;;  %v459_v7 = vld [vmem:[%s5128_s2] sm:$0xf] }
  0x7d   : > { %v4020_v33 = vld [vmem:[%s5127_s1 + $0xe8] ss:$16 sps:$4 sm:$0xff]   ;;  %v4023_v34 = vld [vmem:[#allocation2 + $0x4] ss:$8 sps:$4 sm:$0xff]   ;;  %v4026_v36 = vld [vmem:[#allocation2 + $0x14] ss:$8 sps:$4 sm:$0xff]  }
  0x7e   : > { %695 = vmatpush1.bf16.msra.mxu1 %v4005_v18  ;;  %v4021_v35 = vld [vmem:[#allocation2] ss:$8 sps:$4 sm:$0xff]   ;;  %v4024_v37 = vld [vmem:[#allocation2 + $0x10] ss:$8 sps:$4 sm:$0xff]   ;;  %v4029_v38 = vld [vmem:[#allocation2 + $0x24] ss:$8 sps:$4 sm:$0xff]  }
  0x7f   : > { %654 = vmatpush1.bf16.msra.mxu0 %v3983_v8  ;;  %696 = vmatprep.subr.bf16.mxu1 %v4006_v20  ;;  %v4027_v39 = vld [vmem:[#allocation2 + $0x20] ss:$8 sps:$4 sm:$0xff]   ;;  %v4032_v40 = vld [vmem:[#allocation2 + $0x34] ss:$8 sps:$4 sm:$0xff]   ;;  %v4030_v41 = vld [vmem:[#allocation2 + $0x30] ss:$8 sps:$4 sm:$0xff]  }
  0x80   : > { %655 = vmatprep.subr.bf16.mxu0 %v3984_v9  ;;  %v4035_v42 = vld [vmem:[#allocation2 + $0x44] ss:$8 sps:$4 sm:$0xff]   ;;  %v4033_v43 = vld [vmem:[#allocation2 + $0x40] ss:$8 sps:$4 sm:$0xff]   ;;  %v4038_v44 = vld [vmem:[#allocation2 + $0x54] ss:$8 sps:$4 sm:$0xff]  }
  0x81   : > { %v4036_v45 = vld [vmem:[#allocation2 + $0x50] ss:$8 sps:$4 sm:$0xff]   ;;  %v4041_v46 = vld [vmem:[#allocation2 + $0x64] ss:$8 sps:$4 sm:$0xff]   ;;  %v4039_v47 = vld [vmem:[#allocation2 + $0x60] ss:$8 sps:$4 sm:$0xff]  }
  0x82   : > { %697 = vmatpush1.bf16.msra.mxu1 %v4008_v22  ;;  %v4044_v48 = vld [vmem:[#allocation2 + $0x74] ss:$8 sps:$4 sm:$0xff]   ;;  %v4042_v49 = vld [vmem:[#allocation2 + $0x70] ss:$8 sps:$4 sm:$0xff]   ;;  %v4047_v50 = vld [vmem:[#allocation2 + $0x84] ss:$8 sps:$4 sm:$0xff]  }
  0x83   : > { %656 = vmatpush1.bf16.msra.mxu0 %v3986_v13  ;;  %698 = vmatprep.subr.bf16.mxu1 %v4009_v24  ;;  %v4045_v51 = vld [vmem:[#allocation2 + $0x80] ss:$8 sps:$4 sm:$0xff]   ;;  %v4050_v52 = vld [vmem:[#allocation2 + $0x94] ss:$8 sps:$4 sm:$0xff]   ;;  %v4048_v53 = vld [vmem:[#allocation2 + $0x90] ss:$8 sps:$4 sm:$0xff]  }
  0x84   : > { %657 = vmatprep.subr.bf16.mxu0 %v3987_v15  ;;  %v4053_v54 = vld [vmem:[#allocation2 + $0xa4] ss:$8 sps:$4 sm:$0xff]   ;;  %v4051_v55 = vld [vmem:[#allocation2 + $0xa0] ss:$8 sps:$4 sm:$0xff]   ;;  %v4056_v56 = vld [vmem:[#allocation2 + $0xb4] ss:$8 sps:$4 sm:$0xff]  }
  0x85   : > { %v4054_v57 = vld [vmem:[#allocation2 + $0xb0] ss:$8 sps:$4 sm:$0xff]   ;;  %v4059_v58 = vld [vmem:[#allocation2 + $0xc4] ss:$8 sps:$4 sm:$0xff]   ;;  %v4057_v59 = vld [vmem:[#allocation2 + $0xc0] ss:$8 sps:$4 sm:$0xff]  }
  0x86   : > { %699 = vmatpush1.bf16.msra.mxu1 %v4011_v26  ;;  %v4062_v60 = vld [vmem:[#allocation2 + $0xd4] ss:$8 sps:$4 sm:$0xff]   ;;  %v4060_v61 = vld [vmem:[#allocation2 + $0xd0] ss:$8 sps:$4 sm:$0xff]   ;;  %v4065_v62 = vld [vmem:[#allocation2 + $0xe4] ss:$8 sps:$4 sm:$0xff]  }
  0x87   : > { %658 = vmatpush1.bf16.msra.mxu0 %v3989_v17  ;;  %700 = vmatprep.subr.bf16.mxu1 %v4012_v27  ;;  %v4063_v63 = vld [vmem:[#allocation2 + $0xe0] ss:$8 sps:$4 sm:$0xff]   ;;  %v4068_v1 = vld [vmem:[#allocation2 + $0xf4] ss:$8 sps:$4 sm:$0xff]   ;;  %v4066_v2 = vld [vmem:[#allocation2 + $0xf0] ss:$8 sps:$4 sm:$0xff]  }
  0x88   : > { %659 = vmatprep.subr.bf16.mxu0 %v3990_v19  ;;  %v4071_v3 = vld [vmem:[#allocation2 + $0x104] ss:$8 sps:$4 sm:$0xff]   ;;  %v4989_v6 = vsub.s32 0, %v4986_v5  ;;  %v4995_v8 = vsub.s32 1, %v4986_v5  ;;  %v475_v24 = vsub.s32 3, %v4986_v5 }
  0x89   : > { %v4069_v27 = vld [vmem:[#allocation2 + $0x100] ss:$8 sps:$4 sm:$0xff]  }
  0x8a   : > { %701 = vmatpush1.bf16.msra.mxu1 %v4014_v29  ;;  %v464_v9 = vrot.slane %v459_v7, %v4989_v6  ;;  %v468_v10 = vrot.slane %v459_v7, %v4995_v8  ;;  %v4105_v4 = vld [vmem:[#allocation2 + $0x1c0] ss:$8 sps:$4 sm:$0xff]  }
  0x8b   : > { %660 = vmatpush1.bf16.msra.mxu0 %v3992_v21  ;;  %702 = vmatprep.subr.bf16.mxu1 %v4015_v30  ;;  %v471_v21 = vsub.s32 2, %v4986_v5  ;;  %v476_v30 = vrot.slane %v459_v7, %v475_v24 }
  0x8c   : > { %661 = vmatprep.subr.bf16.mxu0 %v3993_v23 }
  0x8d   : > { %v472_v29 = vrot.slane %v459_v7, %v471_v21  ;;  %v4110_v7 = vld [vmem:[#allocation2 + $0x1d4] ss:$8 sps:$4 sm:$0xff]  }
  0x8e   : > { %703 = vmatpush1.bf16.msra.mxu1 %v4017_v31  ;;  %v4072_v31 = vld [vmem:[#allocation2 + $0x110] ss:$8 sps:$4 sm:$0xff]  }
  0x8f   : > { %662 = vmatpush1.bf16.msra.mxu0 %v3995_v25  ;;  %704 = vmatprep.subr.bf16.mxu1 %v4018_v32 }
  0x92   : > { %680 = vmatmul.mubr.bf16.vlgmr.msra.gmra.mrb[0].mxu0 %v3996_v28  ;;  %705 = vmatpush1.bf16.msra.mxu1 %v4020_v33  ;;  %v4077_v33 = vld [vmem:[#allocation2 + $0x124] ss:$8 sps:$4 sm:$0xff]  }
  0x93   : > { %1141 = vmatprep.subr.bf16.mxu1 %v4023_v34 }
  0x95   : > { %723 = vmatmul.mubr.bf16.vlgmr.msra.gmra.mrb[0].mxu1 %v3996_v28  ;;  %v4074_v28 = vld [vmem:[#allocation2 + $0x114] ss:$8 sps:$4 sm:$0xff]  }
  0x96   : > { %1142 = vmatpush1.bf16.msra.mxu1 %v4021_v35 }
  0x97   : > { %1143 = vmatprep.subr.bf16.mxu1 %v4026_v36 }
  0x9a   : > { %1144 = vmatpush1.bf16.msra.mxu1 %v4024_v37 }
  0x9b   : > { %1145 = vmatprep.subr.bf16.mxu1 %v4029_v38 }
  0x9e   : > { %1146 = vmatpush1.bf16.msra.mxu1 %v4027_v39 }
  0x9f   : > { %1147 = vmatprep.subr.bf16.mxu1 %v4032_v40 }
  0xa2   : > { %1148 = vmatpush1.bf16.msra.mxu1 %v4030_v41  ;;  %v4075_v41 = vld [vmem:[#allocation2 + $0x120] ss:$8 sps:$4 sm:$0xff]  }
  0xa3   : > { %1149 = vmatprep.subr.bf16.mxu1 %v4035_v42 }
  0xa6   : > { %1150 = vmatpush1.bf16.msra.mxu1 %v4033_v43 }
  0xa7   : > { %1151 = vmatprep.subr.bf16.mxu1 %v4038_v44  ;;  %v4080_v44 = vld [vmem:[#allocation2 + $0x134] ss:$8 sps:$4 sm:$0xff]  }
  0xaa   : > { %1152 = vmatpush1.bf16.msra.mxu1 %v4036_v45 }
  0xab   : > { %1153 = vmatprep.subr.bf16.mxu1 %v4041_v46 }
  0xae   : > { %1154 = vmatpush1.bf16.msra.mxu1 %v4039_v47 }
  0xaf   : > { %1155 = vmatprep.subr.bf16.mxu1 %v4044_v48  ;;  %v4078_v48 = vld [vmem:[#allocation2 + $0x130] ss:$8 sps:$4 sm:$0xff]  }
  0xb2   : > { %1156 = vmatpush1.bf16.msra.mxu1 %v4042_v49 }
  0xb3   : > { %1157 = vmatprep.subr.bf16.mxu1 %v4047_v50  ;;  %v4083_v50 = vld [vmem:[#allocation2 + $0x144] ss:$8 sps:$4 sm:$0xff]  }
  0xb6   : > { %1158 = vmatpush1.bf16.msra.mxu1 %v4045_v51  ;;  %v4081_v51 = vld [vmem:[#allocation2 + $0x140] ss:$8 sps:$4 sm:$0xff]  }
  0xb7   : > { %1159 = vmatprep.subr.bf16.mxu1 %v4050_v52  ;;  %v4086_v52 = vld [vmem:[#allocation2 + $0x154] ss:$8 sps:$4 sm:$0xff]  }
  0xba   : > { %1160 = vmatpush1.bf16.msra.mxu1 %v4048_v53  ;;  %v4084_v53 = vld [vmem:[#allocation2 + $0x150] ss:$8 sps:$4 sm:$0xff]  }
  0xbb   : > { %1161 = vmatprep.subr.bf16.mxu1 %v4053_v54  ;;  %v4089_v54 = vld [vmem:[#allocation2 + $0x164] ss:$8 sps:$4 sm:$0xff]  }
  0xbe   : > { %1162 = vmatpush1.bf16.msra.mxu1 %v4051_v55  ;;  %v4087_v55 = vld [vmem:[#allocation2 + $0x160] ss:$8 sps:$4 sm:$0xff]  }
  0xbf   : > { %1163 = vmatprep.subr.bf16.mxu1 %v4056_v56  ;;  %v4092_v56 = vld [vmem:[#allocation2 + $0x174] ss:$8 sps:$4 sm:$0xff]  }
  0xc2   : > { %1164 = vmatpush1.bf16.msra.mxu1 %v4054_v57  ;;  %v4090_v57 = vld [vmem:[#allocation2 + $0x170] ss:$8 sps:$4 sm:$0xff]  }
  0xc3   : > { %1165 = vmatprep.subr.bf16.mxu1 %v4059_v58  ;;  %v4095_v58 = vld [vmem:[#allocation2 + $0x184] ss:$8 sps:$4 sm:$0xff]  }
  0xc6   : > { %1166 = vmatpush1.bf16.msra.mxu1 %v4057_v59  ;;  %v4093_v59 = vld [vmem:[#allocation2 + $0x180] ss:$8 sps:$4 sm:$0xff]  }
  0xc7   : > { %1167 = vmatprep.subr.bf16.mxu1 %v4062_v60  ;;  %v4098_v60 = vld [vmem:[#allocation2 + $0x194] ss:$8 sps:$4 sm:$0xff]  }
  0xca   : > { %1168 = vmatpush1.bf16.msra.mxu1 %v4060_v61  ;;  %v4096_v61 = vld [vmem:[#allocation2 + $0x190] ss:$8 sps:$4 sm:$0xff]  }
  0xcb   : > { %1169 = vmatprep.subr.bf16.mxu1 %v4065_v62  ;;  %v4101_v62 = vld [vmem:[#allocation2 + $0x1a4] ss:$8 sps:$4 sm:$0xff]  }
  0xce   : > { %1170 = vmatpush1.bf16.msra.mxu1 %v4063_v63  ;;  %v4099_v63 = vld [vmem:[#allocation2 + $0x1a0] ss:$8 sps:$4 sm:$0xff]  }
  0xcf   : > { %1171 = vmatprep.subr.bf16.mxu1 %v4068_v1  ;;  %v4104_v1 = vld [vmem:[#allocation2 + $0x1b4] ss:$8 sps:$4 sm:$0xff]  }
  0xd2   : > { %1172 = vmatpush1.bf16.msra.mxu1 %v4066_v2  ;;  %v4102_v2 = vld [vmem:[#allocation2 + $0x1b0] ss:$8 sps:$4 sm:$0xff]  }
  0xd3   : > { %1184 = vmatprep.subr.bf16.mxu1 %v4071_v3  ;;  %v4107_v3 = vld [vmem:[#allocation2 + $0x1c4] ss:$8 sps:$4 sm:$0xff]  }
 0x165   : > { %v681_v11 = vpop.f32.mrb[0].mxu0 }
 0x166   : > { %v682_v12 = vadd.f32 %v681_v11, %v464_v9  ;;  %v683_v13 = vpop.f32.mrb[1].mxu0  ;;  %v4111_v11 = vld [vmem:[#allocation2 + $0x1e0] ss:$8 sps:$4 sm:$0xff]  }
 0x167   : > { %v684_v14 = vadd.f32 %v683_v13, %v468_v10  ;;  %v685_v15 = vpop.f32.mrb[2].mxu0  ;;  %v4114_v13 = vld [vmem:[#allocation2 + $0x1f0] ss:$8 sps:$4 sm:$0xff]  }
 0x168   : > { %v686_v16 = vadd.f32 %v685_v15, %v464_v9  ;;  %v687_v17 = vpop.f32.mrb[3].mxu0  ;;  %v733_v19 = vmax.f32 %v682_v12, 0.0  ;;  %v724_v32 = vpop.f32.mrb[0].mxu1  ;;  %v4108_v9 = vld [vmem:[#allocation2 + $0x1d0] ss:$8 sps:$4 sm:$0xff]  }
 0x169   : > { %v688_v18 = vadd.f32 %v687_v17, %v468_v10  ;;  %v734_v22 = vmax.f32 %v684_v14, 0.0  ;;  %v725_v34 = vadd.f32 %v724_v32, %v472_v29  ;;  %v726_v35 = vpop.f32.mrb[1].mxu1  ;;  %v4113_v10 = vld [vmem:[#allocation2 + $0x1e4] ss:$8 sps:$4 sm:$0xff]   ;;  %v4116_v12 = vld [vmem:[#allocation2 + $0x1f4] ss:$8 sps:$4 sm:$0xff]  }
 0x16a   : > { %v737_v20 = vmax.f32 %v686_v16, 0.0  ;;  %v727_v36 = vadd.f32 %v726_v35, %v476_v30  ;;  %v728_v37 = vpop.f32.mrb[2].mxu1  ;;  %v4119_v14 = vld [vmem:[#allocation4 + $0x4] ss:$8 sps:$4 sm:$0xff]   ;;  %v4117_v15 = vld [vmem:[#allocation4] ss:$8 sps:$4 sm:$0xff]  }
 0x16b   : > { %v738_v23 = vmax.f32 %v688_v18, 0.0  ;;  %v735_v38 = vmax.f32 %v725_v34, 0.0  ;;  %v729_v39 = vadd.f32 %v728_v37, %v472_v29  ;;  %v730_v40 = vpop.f32.mrb[3].mxu1  ;;  %v4122_v16 = vld [vmem:[#allocation4 + $0x14] ss:$8 sps:$4 sm:$0xff]  }
 0x16c   : > { %v741_v25 = vpack.c.bf16 %v737_v20, %v733_v19  ;;  %v736_v42 = vmax.f32 %v727_v36, 0.0  ;;  %v731_v43 = vadd.f32 %v730_v40, %v476_v30  ;;  %v4120_v17 = vld [vmem:[#allocation4 + $0x10] ss:$8 sps:$4 sm:$0xff]   ;;  %v4125_v18 = vld [vmem:[#allocation4 + $0x24] ss:$8 sps:$4 sm:$0xff]  }
 0x16d   : > { %v742_v26 = vpack.c.bf16 %v738_v23, %v734_v22  ;;  %v739_v45 = vmax.f32 %v729_v39, 0.0  ;;  %v4123_v19 = vld [vmem:[#allocation4 + $0x20] ss:$8 sps:$4 sm:$0xff]   ;;  %v4128_v20 = vld [vmem:[#allocation4 + $0x34] ss:$8 sps:$4 sm:$0xff]  }
 0x16e   : > { %v740_v46 = vmax.f32 %v731_v43, 0.0  ;;  %v4126_v22 = vld [vmem:[#allocation4 + $0x30] ss:$8 sps:$4 sm:$0xff]   ;;  %v4131_v23 = vld [vmem:[#allocation4 + $0x44] ss:$8 sps:$4 sm:$0xff]  }
 0x16f   : > { %1173 = vmatprep.mubr.bf16.mxu1 %v742_v26  ;;  %v743_v47 = vpack.c.bf16 %v739_v45, %v735_v38  ;;  %v4134_v26 = vld [vmem:[#allocation4 + $0x54] ss:$8 sps:$4 sm:$0xff]   ;;  %v4135_v29 = vld [vmem:[#allocation4 + $0x60] ss:$8 sps:$4 sm:$0xff]   ;;  %v4143_v32 = vld [vmem:[#allocation4 + $0x84] ss:$8 sps:$4 sm:$0xff]  }
 0x170   : > { %1174 = vmatmul.mubr.bf16.vlgmr.msra.gmra.mrb[4].mxu1 %v741_v25  ;;  %v744_v49 = vpack.c.bf16 %v740_v46, %v736_v42  ;;  %v4129_v25 = vld [vmem:[#allocation4 + $0x40] ss:$8 sps:$4 sm:$0xff]   ;;  %v4140_v30 = vld [vmem:[#allocation4 + $0x74] ss:$8 sps:$4 sm:$0xff]   ;;  %v4144_v35 = vld [vmem:[#allocation4 + $0x90] ss:$8 sps:$4 sm:$0xff]  }
 0x171   : > { %1185 = vmatpush1.bf16.msra.mxu1 %v4069_v27  ;;  %v4132_v27 = vld [vmem:[#allocation4 + $0x50] ss:$8 sps:$4 sm:$0xff]   ;;  %v4146_v34 = vld [vmem:[#allocation4 + $0x94] ss:$8 sps:$4 sm:$0xff]   ;;  %v4149_v36 = vld [vmem:[#allocation4 + $0xa4] ss:$8 sps:$4 sm:$0xff]  }
 0x172   : > { %1186 = vmatprep.subr.bf16.mxu1 %v4074_v28  ;;  %1216 = vmatprep.mubr.bf16.mxu1 %v744_v49  ;;  %v4137_v28 = vld [vmem:[#allocation4 + $0x64] ss:$8 sps:$4 sm:$0xff]   ;;  %v4147_v37 = vld [vmem:[#allocation4 + $0xa0] ss:$8 sps:$4 sm:$0xff]   ;;  %v4152_v38 = vld [vmem:[#allocation4 + $0xb4] ss:$8 sps:$4 sm:$0xff]  }
 0x173   : > { %v4150_v39 = vld [vmem:[#allocation4 + $0xb0] ss:$8 sps:$4 sm:$0xff]   ;;  %v4155_v40 = vld [vmem:[#allocation4 + $0xc4] ss:$8 sps:$4 sm:$0xff]   ;;  %v4158_v42 = vld [vmem:[#allocation4 + $0xd4] ss:$8 sps:$4 sm:$0xff]  }
 0x174   : > { %v4156_v43 = vld [vmem:[#allocation4 + $0xd0] ss:$8 sps:$4 sm:$0xff]   ;;  %v4159_v45 = vld [vmem:[#allocation4 + $0xe0] ss:$8 sps:$4 sm:$0xff]   ;;  %v4164_v46 = vld [vmem:[#allocation4 + $0xf4] ss:$8 sps:$4 sm:$0xff]  }
 0x175   : > { %1187 = vmatpush1.bf16.msra.mxu1 %v4072_v31  ;;  %v4138_v31 = vld [vmem:[#allocation4 + $0x70] ss:$8 sps:$4 sm:$0xff]   ;;  %v4168_v49 = vld [vmem:[#allocation6 + $0x8] ss:$24 sps:$4 sm:$0xff]  }
 0x176   : > { %1188 = vmatprep.subr.bf16.mxu1 %v4077_v33  ;;  %v4141_v33 = vld [vmem:[#allocation4 + $0x80] ss:$8 sps:$4 sm:$0xff]  }
 0x179   : > { %1189 = vmatpush1.bf16.msra.mxu1 %v4075_v41  ;;  %v4153_v41 = vld [vmem:[#allocation4 + $0xc0] ss:$8 sps:$4 sm:$0xff]  }
 0x17a   : > { %1190 = vmatprep.subr.bf16.mxu1 %v4080_v44  ;;  %v4161_v44 = vld [vmem:[#allocation4 + $0xe4] ss:$8 sps:$4 sm:$0xff]  }
 0x17d   : > { %1191 = vmatpush1.bf16.msra.mxu1 %v4078_v48  ;;  %v4167_v48 = vld [vmem:[#allocation6 + $0x4] ss:$24 sps:$4 sm:$0xff]  }
 0x17e   : > { %1192 = vmatprep.subr.bf16.mxu1 %v4083_v50  ;;  %v4170_v50 = vld [vmem:[#allocation6 + $0xc] ss:$24 sps:$4 sm:$0xff]  }
 0x17f   : > { %2137 = vmatprep.subr.bf16.mxu0 %v4170_v50  ;;  %v4207_v50 = vld [vmem:[#allocation6 + $0x150] ss:$24 sps:$4 sm:$0xff]  }
 0x180   : > { %2138 = vmatpush1.bf16.msra.mxu0 %v4168_v49  ;;  %v4209_v49 = vld [vmem:[#allocation6 + $0x154] ss:$24 sps:$4 sm:$0xff]  }
 0x181   : > { %1193 = vmatpush1.bf16.msra.mxu1 %v4081_v51  ;;  %v4174_v51 = vld [vmem:[#allocation6 + $0x38] ss:$24 sps:$4 sm:$0xff]  }
 0x182   : > { %1194 = vmatprep.subr.bf16.mxu1 %v4086_v52  ;;  %v4176_v52 = vld [vmem:[#allocation6 + $0x3c] ss:$24 sps:$4 sm:$0xff]  }
 0x183   : > { %2139 = vmatprep.subr.bf16.mxu0 %v4176_v52  ;;  %v4213_v52 = vld [vmem:[#allocation6 + $0x180] ss:$24 sps:$4 sm:$0xff]  }
 0x184   : > { %2140 = vmatpush1.bf16.msra.mxu0 %v4174_v51  ;;  %v4215_v51 = vld [vmem:[#allocation6 + $0x184] ss:$24 sps:$4 sm:$0xff]  }
 0x185   : > { %1195 = vmatpush1.bf16.msra.mxu1 %v4084_v53  ;;  %v4180_v53 = vld [vmem:[#allocation6 + $0x68] ss:$24 sps:$4 sm:$0xff]  }
 0x186   : > { %1196 = vmatprep.subr.bf16.mxu1 %v4089_v54  ;;  %v4182_v54 = vld [vmem:[#allocation6 + $0x6c] ss:$24 sps:$4 sm:$0xff]  }
 0x187   : > { %2141 = vmatprep.subr.bf16.mxu0 %v4182_v54  ;;  %v4219_v54 = vld [vmem:[#allocation6 + $0x1b0] ss:$24 sps:$4 sm:$0xff]  }
 0x188   : > { %2142 = vmatpush1.bf16.msra.mxu0 %v4180_v53  ;;  %v4221_v53 = vld [vmem:[#allocation6 + $0x1b4] ss:$24 sps:$4 sm:$0xff]  }
 0x189   : > { %1197 = vmatpush1.bf16.msra.mxu1 %v4087_v55  ;;  %v4186_v55 = vld [vmem:[#allocation6 + $0x98] ss:$24 sps:$4 sm:$0xff]  }
 0x18a   : > { %1198 = vmatprep.subr.bf16.mxu1 %v4092_v56  ;;  %v4188_v56 = vld [vmem:[#allocation6 + $0x9c] ss:$24 sps:$4 sm:$0xff]  }
 0x18b   : > { %2143 = vmatprep.subr.bf16.mxu0 %v4188_v56  ;;  %v4225_v56 = vld [vmem:[#allocation6 + $0x1e0] ss:$24 sps:$4 sm:$0xff]  }
 0x18c   : > { %2144 = vmatpush1.bf16.msra.mxu0 %v4186_v55  ;;  %v4227_v55 = vld [vmem:[#allocation6 + $0x1e4] ss:$24 sps:$4 sm:$0xff]  }
 0x18d   : > { %1199 = vmatpush1.bf16.msra.mxu1 %v4090_v57  ;;  %v4192_v57 = vld [vmem:[#allocation6 + $0xc8] ss:$24 sps:$4 sm:$0xff]  }
 0x18e   : > { %1200 = vmatprep.subr.bf16.mxu1 %v4095_v58  ;;  %v4194_v58 = vld [vmem:[#allocation6 + $0xcc] ss:$24 sps:$4 sm:$0xff]  }
 0x18f   : > { %2145 = vmatprep.subr.bf16.mxu0 %v4194_v58  ;;  %v4231_v58 = vld [vmem:[#allocation6 + $0x210] ss:$24 sps:$4 sm:$0xff]  }
 0x190   : > { %2146 = vmatpush1.bf16.msra.mxu0 %v4192_v57  ;;  %v4233_v57 = vld [vmem:[#allocation6 + $0x214] ss:$24 sps:$4 sm:$0xff]  }
 0x191   : > { %1201 = vmatpush1.bf16.msra.mxu1 %v4093_v59  ;;  %v4198_v59 = vld [vmem:[#allocation6 + $0xf8] ss:$24 sps:$4 sm:$0xff]  }
 0x192   : > { %1202 = vmatprep.subr.bf16.mxu1 %v4098_v60  ;;  %v4200_v60 = vld [vmem:[#allocation6 + $0xfc] ss:$24 sps:$4 sm:$0xff]  }
 0x193   : > { %2147 = vmatprep.subr.bf16.mxu0 %v4200_v60  ;;  %v4237_v60 = vld [vmem:[#allocation6 + $0x240] ss:$24 sps:$4 sm:$0xff]  }
 0x194   : > { %2148 = vmatpush1.bf16.msra.mxu0 %v4198_v59  ;;  %v4239_v59 = vld [vmem:[#allocation6 + $0x244] ss:$24 sps:$4 sm:$0xff]  }
 0x195   : > { %1203 = vmatpush1.bf16.msra.mxu1 %v4096_v61  ;;  %v4204_v61 = vld [vmem:[#allocation6 + $0x128] ss:$24 sps:$4 sm:$0xff]  }
 0x196   : > { %1204 = vmatprep.subr.bf16.mxu1 %v4101_v62  ;;  %v4206_v62 = vld [vmem:[#allocation6 + $0x12c] ss:$24 sps:$4 sm:$0xff]  }
 0x197   : > { %2149 = vmatprep.subr.bf16.mxu0 %v4206_v62  ;;  %v4243_v62 = vld [vmem:[#allocation6 + $0x270] ss:$24 sps:$4 sm:$0xff]  }
 0x198   : > { %2150 = vmatpush1.bf16.msra.mxu0 %v4204_v61  ;;  %v4245_v61 = vld [vmem:[#allocation6 + $0x274] ss:$24 sps:$4 sm:$0xff]  }
 0x199   : > { %1205 = vmatpush1.bf16.msra.mxu1 %v4099_v63  ;;  %v4210_v63 = vld [vmem:[#allocation6 + $0x158] ss:$24 sps:$4 sm:$0xff]  }
 0x19a   : > { %1206 = vmatprep.subr.bf16.mxu1 %v4104_v1  ;;  %v4212_v1 = vld [vmem:[#allocation6 + $0x15c] ss:$24 sps:$4 sm:$0xff]  }
 0x19b   : > { %2151 = vmatprep.subr.bf16.mxu0 %v4212_v1  ;;  %v4249_v1 = vld [vmem:[#allocation6 + $0x2a0] ss:$24 sps:$4 sm:$0xff]  }
 0x19c   : > { %2152 = vmatpush1.bf16.msra.mxu0 %v4210_v63  ;;  %v4251_v63 = vld [vmem:[#allocation6 + $0x2a4] ss:$24 sps:$4 sm:$0xff]  }
 0x19d   : > { %1207 = vmatpush1.bf16.msra.mxu1 %v4102_v2  ;;  %v4216_v2 = vld [vmem:[#allocation6 + $0x188] ss:$24 sps:$4 sm:$0xff]  }
 0x19e   : > { %1208 = vmatprep.subr.bf16.mxu1 %v4107_v3  ;;  %v4218_v3 = vld [vmem:[#allocation6 + $0x18c] ss:$24 sps:$4 sm:$0xff]  }
 0x19f   : > { %2153 = vmatprep.subr.bf16.mxu0 %v4218_v3  ;;  %v4252_v3 = vld [vmem:[#allocation6 + $0x2a8] ss:$24 sps:$4 sm:$0xff]  }
 0x1a0   : > { %2154 = vmatpush1.bf16.msra.mxu0 %v4216_v2  ;;  %v4254_v2 = vld [vmem:[#allocation6 + $0x2ac] ss:$24 sps:$4 sm:$0xff]  }
 0x1a1   : > { %1209 = vmatpush1.bf16.msra.mxu1 %v4105_v4  ;;  %v4222_v4 = vld [vmem:[#allocation6 + $0x1b8] ss:$24 sps:$4 sm:$0xff]  }
 0x1a2   : > { %1210 = vmatprep.subr.bf16.mxu1 %v4110_v7  ;;  %v4224_v7 = vld [vmem:[#allocation6 + $0x1bc] ss:$24 sps:$4 sm:$0xff]  }
 0x1a3   : > { %2155 = vmatprep.subr.bf16.mxu0 %v4224_v7  ;;  %v4255_v7 = vld [vmem:[#allocation6 + $0x2d0] ss:$24 sps:$4 sm:$0xff]  }
 0x1a4   : > { %2156 = vmatpush1.bf16.msra.mxu0 %v4222_v4  ;;  %v4257_v4 = vld [vmem:[#allocation6 + $0x2d4] ss:$24 sps:$4 sm:$0xff]  }
 0x1a5   : > { %1211 = vmatpush1.bf16.msra.mxu1 %v4108_v9  ;;  %v4228_v9 = vld [vmem:[#allocation6 + $0x1e8] ss:$24 sps:$4 sm:$0xff]  }
 0x1a6   : > { %1212 = vmatprep.subr.bf16.mxu1 %v4113_v10  ;;  %v4230_v10 = vld [vmem:[#allocation6 + $0x1ec] ss:$24 sps:$4 sm:$0xff]  }
 0x1a7   : > { %2157 = vmatprep.subr.bf16.mxu0 %v4230_v10  ;;  %v4258_v10 = vld [vmem:[#allocation6 + $0x2d8] ss:$24 sps:$4 sm:$0xff]  }
 0x1a8   : > { %2158 = vmatpush1.bf16.msra.mxu0 %v4228_v9  ;;  %v4260_v9 = vld [vmem:[#allocation6 + $0x2dc] ss:$24 sps:$4 sm:$0xff]  }
 0x1a9   : > { %1213 = vmatpush1.bf16.msra.mxu1 %v4111_v11  ;;  %v4234_v11 = vld [vmem:[#allocation6 + $0x218] ss:$24 sps:$4 sm:$0xff]  }
 0x1aa   : > { %1214 = vmatprep.subr.bf16.mxu1 %v4116_v12  ;;  %v4236_v12 = vld [vmem:[#allocation6 + $0x21c] ss:$24 sps:$4 sm:$0xff]  }
 0x1ab   : > { %2159 = vmatprep.subr.bf16.mxu0 %v4236_v12  ;;  %v1265_v12 = vld [vmem:[%s5132_s6] sm:$0x3] }
 0x1ac   : > { %2160 = vmatpush1.bf16.msra.mxu0 %v4234_v11  ;;  %v4263_v11 = vld [vmem:[#allocation6 + $0x14] ss:$24 sps:$4 sm:$0xff]  }
 0x1ad   : > { %1215 = vmatpush1.bf16.msra.mxu1 %v4114_v13  ;;  %v4240_v13 = vld [vmem:[#allocation6 + $0x248] ss:$24 sps:$4 sm:$0xff]  }
 0x1ae   : > { %1437 = vmatprep.subr.bf16.mxu1 %v4119_v14  ;;  %v4242_v14 = vld [vmem:[#allocation6 + $0x24c] ss:$24 sps:$4 sm:$0xff]  }
 0x1af   : > { %2161 = vmatprep.subr.bf16.mxu0 %v4242_v14  ;;  %v1274_v14 = vrot.slane %v1265_v12, %v4995_v8 }
 0x1b0   : > { %1217 = vmatmul.mubr.bf16.vlgmr.msra.gmra.mrb[4].mxu1 %v743_v47  ;;  %v4162_v47 = vld [vmem:[#allocation4 + $0xf0] ss:$8 sps:$4 sm:$0xff]   ;;  %2162 = vmatpush1.bf16.msra.mxu0 %v4240_v13  ;;  %v1270_v13 = vrot.slane %v1265_v12, %v4989_v6  ;;  %v4326_v12 = vld [vmem:[#allocation7 + $0x54] ss:$8 sps:$4 sm:$0xff]  }
 0x1b1   : > { %1438 = vmatpush1.bf16.msra.mxu1 %v4117_v15  ;;  %v4246_v15 = vld [vmem:[#allocation6 + $0x278] ss:$24 sps:$4 sm:$0xff]  }
 0x1b2   : > { %1439 = vmatprep.subr.bf16.mxu1 %v4122_v16  ;;  %v4248_v16 = vld [vmem:[#allocation6 + $0x27c] ss:$24 sps:$4 sm:$0xff]  }
 0x1b3   : > { %2163 = vmatprep.subr.bf16.mxu0 %v4248_v16 }
 0x1b4   : > { %2164 = vmatpush1.bf16.msra.mxu0 %v4246_v15 }
 0x1b5   : > { %1440 = vmatpush1.bf16.msra.mxu1 %v4120_v17  ;;  %v809_v17 = vld [vmem:[%s5130_s4] sm:$0x3]  ;;  %2165 = vmatprep.subr.bf16.mxu0 %v4254_v2  ;;  %v4312_v2 = vld [vmem:[#allocation7 + $0x10] ss:$8 sps:$4 sm:$0xff]  }
 0x1b6   : > { %1441 = vmatprep.subr.bf16.mxu1 %v4125_v18  ;;  %v814_v18 = vrot.slane %v809_v17, %v4989_v6 }
 0x1b8   : > { %2166 = vmatpush1.bf16.msra.mxu0 %v4252_v3  ;;  %v4317_v3 = vld [vmem:[#allocation7 + $0x24] ss:$8 sps:$4 sm:$0xff]  }
 0x1b9   : > { %1442 = vmatpush1.bf16.msra.mxu1 %v4123_v19  ;;  %v818_v19 = vrot.slane %v809_v17, %v4995_v8  ;;  %2167 = vmatprep.subr.bf16.mxu0 %v4260_v9  ;;  %v4318_v9 = vld [vmem:[#allocation7 + $0x30] ss:$8 sps:$4 sm:$0xff]  }
 0x1ba   : > { %1443 = vmatprep.subr.bf16.mxu1 %v4128_v20 }
 0x1bc   : > { %2168 = vmatpush1.bf16.msra.mxu0 %v4258_v10  ;;  %v4323_v10 = vld [vmem:[#allocation7 + $0x44] ss:$8 sps:$4 sm:$0xff]  }
 0x1bd   : > { %1444 = vmatpush1.bf16.msra.mxu1 %v4126_v22 }
 0x1be   : > { %1445 = vmatprep.subr.bf16.mxu1 %v4131_v23 }
 0x1c1   : > { %1446 = vmatpush1.bf16.msra.mxu1 %v4129_v25 }
 0x1c2   : > { %1447 = vmatprep.subr.bf16.mxu1 %v4134_v26 }
 0x1c5   : > { %1448 = vmatpush1.bf16.msra.mxu1 %v4132_v27 }
 0x1c6   : > { %1449 = vmatprep.subr.bf16.mxu1 %v4137_v28 }
 0x1c9   : > { %1450 = vmatpush1.bf16.msra.mxu1 %v4135_v29 }
 0x1ca   : > { %1451 = vmatprep.subr.bf16.mxu1 %v4140_v30 }
 0x1cd   : > { %1452 = vmatpush1.bf16.msra.mxu1 %v4138_v31 }
 0x1ce   : > { %1453 = vmatprep.subr.bf16.mxu1 %v4143_v32 }
 0x1d1   : > { %1454 = vmatpush1.bf16.msra.mxu1 %v4141_v33 }
 0x1d2   : > { %1455 = vmatprep.subr.bf16.mxu1 %v4146_v34 }
 0x1d5   : > { %1456 = vmatpush1.bf16.msra.mxu1 %v4144_v35 }
 0x1d6   : > { %1457 = vmatprep.subr.bf16.mxu1 %v4149_v36  ;;  %v4165_v36 = vld [vmem:[#allocation6] ss:$24 sps:$4 sm:$0xff]  }
 0x1d9   : > { %1458 = vmatpush1.bf16.msra.mxu1 %v4147_v37  ;;  %v4173_v37 = vld [vmem:[#allocation6 + $0x34] ss:$24 sps:$4 sm:$0xff]  }
 0x1da   : > { %1459 = vmatprep.subr.bf16.mxu1 %v4152_v38  ;;  %v4171_v38 = vld [vmem:[#allocation6 + $0x30] ss:$24 sps:$4 sm:$0xff]  }
 0x1dd   : > { %1460 = vmatpush1.bf16.msra.mxu1 %v4150_v39  ;;  %v4179_v39 = vld [vmem:[#allocation6 + $0x64] ss:$24 sps:$4 sm:$0xff]  }
 0x1de   : > { %1461 = vmatprep.subr.bf16.mxu1 %v4155_v40  ;;  %v4177_v40 = vld [vmem:[#allocation6 + $0x60] ss:$24 sps:$4 sm:$0xff]  }
 0x1e1   : > { %1462 = vmatpush1.bf16.msra.mxu1 %v4153_v41  ;;  %v4185_v41 = vld [vmem:[#allocation6 + $0x94] ss:$24 sps:$4 sm:$0xff]  }
 0x1e2   : > { %1463 = vmatprep.subr.bf16.mxu1 %v4158_v42  ;;  %v4183_v42 = vld [vmem:[#allocation6 + $0x90] ss:$24 sps:$4 sm:$0xff]  }
 0x1e5   : > { %1464 = vmatpush1.bf16.msra.mxu1 %v4156_v43  ;;  %v4191_v43 = vld [vmem:[#allocation6 + $0xc4] ss:$24 sps:$4 sm:$0xff]  }
 0x1e6   : > { %1465 = vmatprep.subr.bf16.mxu1 %v4161_v44  ;;  %v4189_v44 = vld [vmem:[#allocation6 + $0xc0] ss:$24 sps:$4 sm:$0xff]  }
 0x1e9   : > { %1466 = vmatpush1.bf16.msra.mxu1 %v4159_v45  ;;  %v4197_v45 = vld [vmem:[#allocation6 + $0xf4] ss:$24 sps:$4 sm:$0xff]  }
 0x1ea   : > { %1467 = vmatprep.subr.bf16.mxu1 %v4164_v46  ;;  %v4195_v46 = vld [vmem:[#allocation6 + $0xf0] ss:$24 sps:$4 sm:$0xff]  }
 0x1ed   : > { %1468 = vmatpush1.bf16.msra.mxu1 %v4162_v47  ;;  %v4203_v47 = vld [vmem:[#allocation6 + $0x124] ss:$24 sps:$4 sm:$0xff]  }
 0x1ee   : > { %2094 = vmatprep.subr.bf16.mxu1 %v4167_v48  ;;  %v4201_v48 = vld [vmem:[#allocation6 + $0x120] ss:$24 sps:$4 sm:$0xff]  }
 0x283   : > { %v1218_v20 = vpop.f32.mrb[4].mxu1 }
 0x284   : > { %v3894_v22 = vadd.f32 %v1218_v20, %v814_v18  ;;  %v1220_v23 = vpop.f32.mrb[5].mxu1 }
 0x285   : > { %v3895_v25 = vadd.f32 %v1220_v23, %v818_v19  ;;  %v1222_v26 = vpop.f32.mrb[6].mxu1 }
 0x286   : > { %v3896_v27 = vadd.f32 %v1222_v26, %v814_v18  ;;  %v1224_v28 = vpop.f32.mrb[7].mxu1  ;;  %v1227_v30 = vmax.f32 %v3894_v22, 0.0 }
 0x287   : > { %v3897_v29 = vadd.f32 %v1224_v28, %v818_v19  ;;  %v1228_v32 = vmax.f32 %v3895_v25, 0.0 }
 0x288   : > { %v1229_v31 = vmax.f32 %v3896_v27, 0.0 }
 0x289   : > { %v1230_v33 = vmax.f32 %v3897_v29, 0.0 }
 0x28a   : > { %v1231_v34 = vpack.c.bf16 %v1229_v31, %v1227_v30  ;;  %v4261_v31 = vld [vmem:[#allocation6 + $0x10] ss:$24 sps:$4 sm:$0xff]  }
 0x28b   : > { %v1232_v35 = vpack.c.bf16 %v1230_v33, %v1228_v32  ;;  %v4266_v32 = vld [vmem:[#allocation6 + $0x44] ss:$24 sps:$4 sm:$0xff]   ;;  %v4264_v33 = vld [vmem:[#allocation6 + $0x40] ss:$24 sps:$4 sm:$0xff]  }
 0x28d   : > { %1469 = vmatprep.mubr.bf16.mxu1 %v1232_v35  ;;  %v4267_v35 = vld [vmem:[#allocation6 + $0x70] ss:$24 sps:$4 sm:$0xff]  }
 0x28e   : > { %1470 = vmatmul.mubr.bf16.vlgmr.msra.gmra.mrb[8].mxu1 %v1231_v34  ;;  %v4269_v34 = vld [vmem:[#allocation6 + $0x74] ss:$24 sps:$4 sm:$0xff]  }
 0x28f   : > { %2095 = vmatpush1.bf16.msra.mxu1 %v4165_v36  ;;  %v4272_v36 = vld [vmem:[#allocation6 + $0xa4] ss:$24 sps:$4 sm:$0xff]  }
 0x290   : > { %2096 = vmatprep.subr.bf16.mxu1 %v4173_v37  ;;  %v4270_v37 = vld [vmem:[#allocation6 + $0xa0] ss:$24 sps:$4 sm:$0xff]  }
 0x293   : > { %2097 = vmatpush1.bf16.msra.mxu1 %v4171_v38  ;;  %v4275_v38 = vld [vmem:[#allocation6 + $0xd4] ss:$24 sps:$4 sm:$0xff]  }
 0x294   : > { %2098 = vmatprep.subr.bf16.mxu1 %v4179_v39  ;;  %v4273_v39 = vld [vmem:[#allocation6 + $0xd0] ss:$24 sps:$4 sm:$0xff]  }
 0x297   : > { %2099 = vmatpush1.bf16.msra.mxu1 %v4177_v40  ;;  %v4278_v40 = vld [vmem:[#allocation6 + $0x104] ss:$24 sps:$4 sm:$0xff]  }
 0x298   : > { %2100 = vmatprep.subr.bf16.mxu1 %v4185_v41  ;;  %v4276_v41 = vld [vmem:[#allocation6 + $0x100] ss:$24 sps:$4 sm:$0xff]  }
 0x29b   : > { %2101 = vmatpush1.bf16.msra.mxu1 %v4183_v42  ;;  %v4281_v42 = vld [vmem:[#allocation6 + $0x134] ss:$24 sps:$4 sm:$0xff]  }
 0x29c   : > { %2102 = vmatprep.subr.bf16.mxu1 %v4191_v43  ;;  %v4279_v43 = vld [vmem:[#allocation6 + $0x130] ss:$24 sps:$4 sm:$0xff]  }
 0x29f   : > { %2103 = vmatpush1.bf16.msra.mxu1 %v4189_v44  ;;  %v4284_v44 = vld [vmem:[#allocation6 + $0x164] ss:$24 sps:$4 sm:$0xff]  }
 0x2a0   : > { %2104 = vmatprep.subr.bf16.mxu1 %v4197_v45  ;;  %v4282_v45 = vld [vmem:[#allocation6 + $0x160] ss:$24 sps:$4 sm:$0xff]  }
 0x2a3   : > { %2105 = vmatpush1.bf16.msra.mxu1 %v4195_v46  ;;  %v4287_v46 = vld [vmem:[#allocation6 + $0x194] ss:$24 sps:$4 sm:$0xff]  }
 0x2a4   : > { %2106 = vmatprep.subr.bf16.mxu1 %v4203_v47  ;;  %v4285_v47 = vld [vmem:[#allocation6 + $0x190] ss:$24 sps:$4 sm:$0xff]  }
 0x2a7   : > { %2107 = vmatpush1.bf16.msra.mxu1 %v4201_v48  ;;  %v4290_v48 = vld [vmem:[#allocation6 + $0x1c4] ss:$24 sps:$4 sm:$0xff]  }
 0x2a8   : > { %2108 = vmatprep.subr.bf16.mxu1 %v4209_v49  ;;  %v4288_v49 = vld [vmem:[#allocation6 + $0x1c0] ss:$24 sps:$4 sm:$0xff]  }
 0x2ab   : > { %2109 = vmatpush1.bf16.msra.mxu1 %v4207_v50  ;;  %v4293_v50 = vld [vmem:[#allocation6 + $0x1f4] ss:$24 sps:$4 sm:$0xff]  }
 0x2ac   : > { %2110 = vmatprep.subr.bf16.mxu1 %v4215_v51  ;;  %v4291_v51 = vld [vmem:[#allocation6 + $0x1f0] ss:$24 sps:$4 sm:$0xff]  }
 0x2af   : > { %2111 = vmatpush1.bf16.msra.mxu1 %v4213_v52  ;;  %v4296_v52 = vld [vmem:[#allocation6 + $0x224] ss:$24 sps:$4 sm:$0xff]  }
 0x2b0   : > { %2112 = vmatprep.subr.bf16.mxu1 %v4221_v53  ;;  %v4294_v53 = vld [vmem:[#allocation6 + $0x220] ss:$24 sps:$4 sm:$0xff]  }
 0x2b3   : > { %2113 = vmatpush1.bf16.msra.mxu1 %v4219_v54  ;;  %v4299_v54 = vld [vmem:[#allocation6 + $0x254] ss:$24 sps:$4 sm:$0xff]  }
 0x2b4   : > { %2114 = vmatprep.subr.bf16.mxu1 %v4227_v55  ;;  %v4297_v55 = vld [vmem:[#allocation6 + $0x250] ss:$24 sps:$4 sm:$0xff]  }
 0x2b7   : > { %2115 = vmatpush1.bf16.msra.mxu1 %v4225_v56  ;;  %v4302_v56 = vld [vmem:[#allocation6 + $0x284] ss:$24 sps:$4 sm:$0xff]  }
 0x2b8   : > { %2116 = vmatprep.subr.bf16.mxu1 %v4233_v57  ;;  %v4300_v57 = vld [vmem:[#allocation6 + $0x280] ss:$24 sps:$4 sm:$0xff]  }
 0x2bb   : > { %2117 = vmatpush1.bf16.msra.mxu1 %v4231_v58  ;;  %v4305_v58 = vld [vmem:[#allocation6 + $0x2b4] ss:$24 sps:$4 sm:$0xff]  }
 0x2bc   : > { %2118 = vmatprep.subr.bf16.mxu1 %v4239_v59  ;;  %v4303_v59 = vld [vmem:[#allocation6 + $0x2b0] ss:$24 sps:$4 sm:$0xff]  }
 0x2bf   : > { %2119 = vmatpush1.bf16.msra.mxu1 %v4237_v60  ;;  %v4308_v60 = vld [vmem:[#allocation6 + $0x2e4] ss:$24 sps:$4 sm:$0xff]  }
 0x2c0   : > { %2120 = vmatprep.subr.bf16.mxu1 %v4245_v61  ;;  %v4306_v61 = vld [vmem:[#allocation6 + $0x2e0] ss:$24 sps:$4 sm:$0xff]  }
 0x2c3   : > { %2121 = vmatpush1.bf16.msra.mxu1 %v4243_v62  ;;  %v4309_v62 = vld [vmem:[#allocation7] ss:$8 sps:$4 sm:$0xff]  }
 0x2c4   : > { %2122 = vmatprep.subr.bf16.mxu1 %v4251_v63  ;;  %v4311_v63 = vld [vmem:[#allocation7 + $0x4] ss:$8 sps:$4 sm:$0xff]  }
 0x2c5   : > { %3172 = vmatprep.subr.bf16.mxu0 %v4311_v63 }
 0x2c7   : > { %2123 = vmatpush1.bf16.msra.mxu1 %v4249_v1  ;;  %v4314_v1 = vld [vmem:[#allocation7 + $0x14] ss:$8 sps:$4 sm:$0xff]  }
 0x2c8   : > { %2124 = vmatprep.subr.bf16.mxu1 %v4257_v4  ;;  %v4315_v4 = vld [vmem:[#allocation7 + $0x20] ss:$8 sps:$4 sm:$0xff]  }
 0x2cb   : > { %2125 = vmatpush1.bf16.msra.mxu1 %v4255_v7  ;;  %v4320_v7 = vld [vmem:[#allocation7 + $0x34] ss:$8 sps:$4 sm:$0xff]  }
 0x2cc   : > { %2180 = vmatprep.subr.bf16.mxu1 %v4263_v11  ;;  %v4321_v11 = vld [vmem:[#allocation7 + $0x40] ss:$8 sps:$4 sm:$0xff]  }
 0x361   : > { %v1471_v15 = vpop.f32.mrb[8].mxu1 }
 0x362   : > { %v1472_v16 = vadd.f32 %v1471_v15, %v1270_v13  ;;  %v1473_v17 = vpop.f32.mrb[9].mxu1  ;;  %v4327_v15 = vld [vmem:[#allocation7 + $0x60] ss:$8 sps:$4 sm:$0xff]  }
 0x363   : > { %v1474_v18 = vadd.f32 %v1473_v17, %v1274_v14  ;;  %v1475_v19 = vpop.f32.mrb[10].mxu1  ;;  %v4330_v17 = vld [vmem:[#allocation7 + $0x70] ss:$8 sps:$4 sm:$0xff]  }
 0x364   : > { %v1476_v20 = vadd.f32 %v1475_v19, %v1270_v13  ;;  %v1477_v22 = vpop.f32.mrb[11].mxu1  ;;  %v1480_v25 = vmax.f32 %v1472_v16, 0.0  ;;  %v4324_v13 = vld [vmem:[#allocation7 + $0x50] ss:$8 sps:$4 sm:$0xff]   ;;  %v4332_v16 = vld [vmem:[#allocation7 + $0x74] ss:$8 sps:$4 sm:$0xff]  }
 0x365   : > { %v1478_v23 = vadd.f32 %v1477_v22, %v1274_v14  ;;  %v1481_v27 = vmax.f32 %v1474_v18, 0.0  ;;  %v4329_v14 = vld [vmem:[#allocation7 + $0x64] ss:$8 sps:$4 sm:$0xff]   ;;  %v4333_v19 = vld [vmem:[#allocation7 + $0x80] ss:$8 sps:$4 sm:$0xff]  }
 0x366   : > { %v1482_v26 = vmax.f32 %v1476_v20, 0.0  ;;  %v4335_v18 = vld [vmem:[#allocation7 + $0x84] ss:$8 sps:$4 sm:$0xff]   ;;  %v4338_v20 = vld [vmem:[#allocation7 + $0x94] ss:$8 sps:$4 sm:$0xff]  }
 0x367   : > { %v1483_v28 = vmax.f32 %v1478_v23, 0.0  ;;  %v4336_v22 = vld [vmem:[#allocation7 + $0x90] ss:$8 sps:$4 sm:$0xff]   ;;  %v4341_v23 = vld [vmem:[#allocation7 + $0xa4] ss:$8 sps:$4 sm:$0xff]  }
 0x368   : > { %v5015_v29 = vpack.c.bf16 %v1482_v26, %v1480_v25  ;;  %v4339_v25 = vld [vmem:[#allocation7 + $0xa0] ss:$8 sps:$4 sm:$0xff]   ;;  %v4344_v26 = vld [vmem:[#allocation7 + $0xb4] ss:$8 sps:$4 sm:$0xff]  }
 0x369   : > { %v1485_v30 = vpack.c.bf16 %v1483_v28, %v1481_v27  ;;  %v4342_v27 = vld [vmem:[#allocation7 + $0xb0] ss:$8 sps:$4 sm:$0xff]   ;;  %v4347_v28 = vld [vmem:[#allocation7 + $0xc4] ss:$8 sps:$4 sm:$0xff]  }
 0x36b   : > { %2126 = vmatprep.mubr.bf16.mxu1 %v1485_v30  ;;  %2169 = vmatprep.mubr.bf16.mxu0 %v1485_v30 }
 0x36c   : > { %2127 = vmatmul.mubr.bf16.vlgmr.msra.gmra.mrb[12].mxu1 %v5015_v29  ;;  %2170 = vmatmul.mubr.bf16.vlgmr.msra.gmra.mrb[4].mxu0 %v5015_v29 }
 0x36d   : > { %2181 = vmatpush1.bf16.msra.mxu1 %v4261_v31  ;;  %2212 = vmatprep.mubr.bf16.mxu1 %v1485_v30  ;;  %v4350_v30 = vld [vmem:[#allocation7 + $0xd4] ss:$8 sps:$4 sm:$0xff]   ;;  %v4348_v31 = vld [vmem:[#allocation7 + $0xd0] ss:$8 sps:$4 sm:$0xff]  }
 0x36e   : > { %2182 = vmatprep.subr.bf16.mxu1 %v4266_v32  ;;  %3173 = vmatpush1.bf16.msra.mxu0 %v4309_v62  ;;  %v4353_v32 = vld [vmem:[#allocation7 + $0xe4] ss:$8 sps:$4 sm:$0xff]  }
 0x36f   : > { %3174 = vmatprep.subr.bf16.mxu0 %v4314_v1 }
 0x371   : > { %2183 = vmatpush1.bf16.msra.mxu1 %v4264_v33  ;;  %v4351_v33 = vld [vmem:[#allocation7 + $0xe0] ss:$8 sps:$4 sm:$0xff]  }
 0x372   : > { %2184 = vmatprep.subr.bf16.mxu1 %v4269_v34  ;;  %3175 = vmatpush1.bf16.msra.mxu0 %v4312_v2  ;;  %v4354_v34 = vld [vmem:[#allocation7 + $0xf0] ss:$8 sps:$4 sm:$0xff]  }
 0x373   : > { %3176 = vmatprep.subr.bf16.mxu0 %v4317_v3 }
 0x375   : > { %2185 = vmatpush1.bf16.msra.mxu1 %v4267_v35  ;;  %v4356_v35 = vld [vmem:[#allocation7 + $0xf4] ss:$8 sps:$4 sm:$0xff]  }
 0x376   : > { %2186 = vmatprep.subr.bf16.mxu1 %v4272_v36  ;;  %3177 = vmatpush1.bf16.msra.mxu0 %v4315_v4  ;;  %v4359_v36 = vld [vmem:[#allocation7 + $0x104] ss:$8 sps:$4 sm:$0xff]  }
 0x377   : > { %3178 = vmatprep.subr.bf16.mxu0 %v4320_v7 }
 0x379   : > { %2187 = vmatpush1.bf16.msra.mxu1 %v4270_v37  ;;  %v1582_v37 = vld [vmem:[%s5134_s8] sm:$0x3f] }
 0x37a   : > { %2188 = vmatprep.subr.bf16.mxu1 %v4275_v38  ;;  %3179 = vmatpush1.bf16.msra.mxu0 %v4318_v9  ;;  %v1587_v38 = vrot.slane %v1582_v37, %v4989_v6 }
 0x37b   : > { %3180 = vmatprep.subr.bf16.mxu0 %v4323_v10 }
 0x37d   : > { %2189 = vmatpush1.bf16.msra.mxu1 %v4273_v39  ;;  %v1595_v39 = vrot.slane %v1582_v37, %v471_v21 }
 0x37e   : > { %2190 = vmatprep.subr.bf16.mxu1 %v4278_v40  ;;  %3181 = vmatpush1.bf16.msra.mxu0 %v4321_v11  ;;  %v1591_v40 = vrot.slane %v1582_v37, %v4995_v8 }
 0x37f   : > { %3182 = vmatprep.subr.bf16.mxu0 %v4326_v12  ;;  %v1602_v12 = vsub.s32 4, %v4986_v5 }
 0x381   : > { %2191 = vmatpush1.bf16.msra.mxu1 %v4276_v41 }
 0x382   : > { %2192 = vmatprep.subr.bf16.mxu1 %v4281_v42  ;;  %3183 = vmatpush1.bf16.msra.mxu0 %v4324_v13  ;;  %v1606_v13 = vsub.s32 5, %v4986_v5 }
 0x383   : > { %3184 = vmatprep.subr.bf16.mxu0 %v4329_v14  ;;  %v1599_v14 = vrot.slane %v1582_v37, %v475_v24 }
 0x385   : > { %2193 = vmatpush1.bf16.msra.mxu1 %v4279_v43 }
 0x386   : > { %2194 = vmatprep.subr.bf16.mxu1 %v4284_v44  ;;  %3185 = vmatpush1.bf16.msra.mxu0 %v4327_v15  ;;  %v1603_v15 = vrot.slane %v1582_v37, %v1602_v12 }
 0x387   : > { %3186 = vmatprep.subr.bf16.mxu0 %v4332_v16  ;;  %v1607_v16 = vrot.slane %v1582_v37, %v1606_v13 }
 0x389   : > { %2195 = vmatpush1.bf16.msra.mxu1 %v4282_v45 }
 0x38a   : > { %2196 = vmatprep.subr.bf16.mxu1 %v4287_v46  ;;  %3187 = vmatpush1.bf16.msra.mxu0 %v4330_v17 }
 0x38b   : > { %3188 = vmatprep.subr.bf16.mxu0 %v4335_v18 }
 0x38d   : > { %2197 = vmatpush1.bf16.msra.mxu1 %v4285_v47 }
 0x38e   : > { %2198 = vmatprep.subr.bf16.mxu1 %v4290_v48  ;;  %3189 = vmatpush1.bf16.msra.mxu0 %v4333_v19 }
 0x38f   : > { %3190 = vmatprep.subr.bf16.mxu0 %v4338_v20 }
 0x391   : > { %2199 = vmatpush1.bf16.msra.mxu1 %v4288_v49 }
 0x392   : > { %2200 = vmatprep.subr.bf16.mxu1 %v4293_v50  ;;  %3191 = vmatpush1.bf16.msra.mxu0 %v4336_v22 }
 0x393   : > { %3192 = vmatprep.subr.bf16.mxu0 %v4341_v23 }
 0x395   : > { %2201 = vmatpush1.bf16.msra.mxu1 %v4291_v51 }
 0x396   : > { %2202 = vmatprep.subr.bf16.mxu1 %v4296_v52  ;;  %3193 = vmatpush1.bf16.msra.mxu0 %v4339_v25 }
 0x397   : > { %3194 = vmatprep.subr.bf16.mxu0 %v4344_v26 }
 0x399   : > { %2203 = vmatpush1.bf16.msra.mxu1 %v4294_v53 }
 0x39a   : > { %2204 = vmatprep.subr.bf16.mxu1 %v4299_v54  ;;  %3195 = vmatpush1.bf16.msra.mxu0 %v4342_v27 }
 0x39b   : > { %3196 = vmatprep.subr.bf16.mxu0 %v4347_v28 }
 0x39d   : > { %2205 = vmatpush1.bf16.msra.mxu1 %v4297_v55 }
 0x39e   : > { %2206 = vmatprep.subr.bf16.mxu1 %v4302_v56 }
 0x3a1   : > { %2207 = vmatpush1.bf16.msra.mxu1 %v4300_v57 }
 0x3a2   : > { %2208 = vmatprep.subr.bf16.mxu1 %v4305_v58 }
 0x3a5   : > { %2209 = vmatpush1.bf16.msra.mxu1 %v4303_v59 }
 0x3a6   : > { %2210 = vmatprep.subr.bf16.mxu1 %v4308_v60 }
 0x3a9   : > { %2211 = vmatpush1.bf16.msra.mxu1 %v4306_v61 }
 0x3ac   : > { %2213 = vmatmul.mubr.bf16.vlgmr.msra.gmra.mrb[16].mxu1 %v5015_v29  ;;  %v4345_v29 = vld [vmem:[#allocation7 + $0xc0] ss:$8 sps:$4 sm:$0xff]  }
 0x3ad   : > { %3197 = vmatpush1.bf16.msra.mxu0 %v4345_v29 }
 0x3ae   : > { %3198 = vmatprep.subr.bf16.mxu0 %v4350_v30 }
 0x3b1   : > { %3199 = vmatpush1.bf16.msra.mxu0 %v4348_v31 }
 0x3b2   : > { %3200 = vmatprep.subr.bf16.mxu0 %v4353_v32 }
 0x3b5   : > { %3201 = vmatpush1.bf16.msra.mxu0 %v4351_v33 }
 0x3b6   : > { %3202 = vmatprep.subr.bf16.mxu0 %v4356_v35 }
 0x3b9   : > { %3203 = vmatpush1.bf16.msra.mxu0 %v4354_v34 }
 0x3ba   : > { %3215 = vmatprep.subr.bf16.mxu0 %v4359_v36 }
 0x43f   : > { %v2128_v41 = vpop.f32.mrb[12].mxu1  ;;  %v2171_v42 = vpop.f32.mrb[4].mxu0 }
 0x440   : > { %v2129_v43 = vadd.f32 %v2128_v41, %v1587_v38  ;;  %v2130_v44 = vpop.f32.mrb[13].mxu1  ;;  %v2173_v45 = vpop.f32.mrb[5].mxu0  ;;  %v2172_v46 = vadd.f32 %v2171_v42, %v1595_v39 }
 0x441   : > { %v2131_v47 = vadd.f32 %v2130_v44, %v1591_v40  ;;  %v2132_v48 = vpop.f32.mrb[14].mxu1  ;;  %v2175_v49 = vpop.f32.mrb[6].mxu0  ;;  %v2174_v17 = vadd.f32 %v2173_v45, %v1599_v14 }
 0x442   : > { %v2223_v50 = vmul.f32 %v2129_v43, %v2129_v43  ;;  %v2133_v51 = vadd.f32 %v2132_v48, %v1587_v38  ;;  %v2134_v52 = vpop.f32.mrb[15].mxu1  ;;  %v2177_v53 = vpop.f32.mrb[7].mxu0  ;;  %v2176_v6 = vadd.f32 %v2175_v49, %v1595_v39  ;;  %v2229_v21 = vmul.f32 %v2172_v46, %v2172_v46 }
 0x443   : > { %v2225_v54 = vmul.f32 %v2131_v47, %v2131_v47  ;;  %v2135_v55 = vadd.f32 %v2134_v52, %v1591_v40  ;;  %v2178_v23 = vadd.f32 %v2177_v53, %v1599_v14 }
 0x444   : > { %v2224_v56 = vmul.f32 %v2133_v51, %v2133_v51  ;;  %v2230_v59 = vmul.f32 %v2176_v6, %v2176_v6 }
 0x445   : > { %v2227_v57 = vadd.f32 %v2225_v54, %v2223_v50  ;;  %v2226_v8 = vmul.f32 %v2135_v55, %v2135_v55 }
 0x447   : > { %v2231_v58 = vadd.f32 %v2229_v21, %v2227_v57  ;;  %v2228_v60 = vadd.f32 %v2226_v8, %v2224_v56 }
 0x449   : > { %v2233_v61 = vmax.f32 %v2231_v58, 1e-16  ;;  %v2232_v62 = vadd.f32 %v2230_v59, %v2228_v60 }
 0x44b   : > { %4525 = vrsqrt.f32 %v2233_v61  ;;  %v2234_v63 = vmax.f32 %v2232_v62, 1e-16 }
 0x44d   : > { %4527 = vrsqrt.f32 %v2234_v63 }
 0x455   : > { %v4526_v1 = vpop.eup %4525 }
 0x456   : > { %v5027_v2 = vmul.f32 %v4526_v1, %v2131_v47  ;;  %v5029_v3 = vmul.f32 %v4526_v1, %v2172_v46  ;;  %v5031_v4 = vmul.f32 %v4526_v1, %v2129_v43 }
 0x457   : > { %v4528_v7 = vpop.eup %4527 }
 0x458   : > { %v5033_v9 = vmul.f32 %v4528_v7, %v2135_v55  ;;  %v5035_v10 = vmul.f32 %v4528_v7, %v2176_v6  ;;  %v5037_v11 = vmul.f32 %v4528_v7, %v2133_v51  ;;  %v2249_v22 = vmul.f32 %v5029_v3, %v2174_v17 }
 0x459   : > { %v2257_v27 = vmul.f32 %v5027_v2, %v2174_v17 }
 0x45a   : > { %v2250_v24 = vmul.f32 %v5035_v10, %v2178_v23  ;;  %v2258_v34 = vmul.f32 %v5033_v9, %v2178_v23 }
 0x47f   : > { %v2214_v18 = vpop.f32.mrb[16].mxu1 }
 0x480   : > { %v2215_v19 = vadd.f32 %v2214_v18, %v1603_v15  ;;  %v2216_v20 = vpop.f32.mrb[17].mxu1 }
 0x481   : > { %v2217_v25 = vadd.f32 %v2216_v20, %v1607_v16  ;;  %v2218_v26 = vpop.f32.mrb[18].mxu1 }
 0x482   : > { %v2245_v28 = vmul.f32 %v5029_v3, %v2215_v19  ;;  %v2255_v29 = vmul.f32 %v5031_v4, %v2215_v19  ;;  %v2219_v30 = vadd.f32 %v2218_v26, %v1603_v15  ;;  %v2220_v5 = vpop.f32.mrb[19].mxu1 }
 0x483   : > { %v2243_v31 = vmul.f32 %v5027_v2, %v2217_v25  ;;  %v2251_v32 = vmul.f32 %v5031_v4, %v2217_v25  ;;  %v2221_v33 = vadd.f32 %v2220_v5, %v1607_v16 }
 0x484   : > { %v2259_v35 = vsub.f32 %v2255_v29, %v2257_v27  ;;  %v2246_v36 = vmul.f32 %v5035_v10, %v2219_v30  ;;  %v2256_v37 = vmul.f32 %v5037_v11, %v2219_v30  ;;  %v4357_v30 = vld [vmem:[#allocation7 + $0x100] ss:$8 sps:$4 sm:$0xff]  }
 0x485   : > { %v2247_v38 = vsub.f32 %v2243_v31, %v2245_v28  ;;  %v2253_v39 = vsub.f32 %v2249_v22, %v2251_v32  ;;  %v2244_v40 = vmul.f32 %v5033_v9, %v2221_v33  ;;  %v2252_v41 = vmul.f32 %v5037_v11, %v2221_v33  ;;  %v4362_v32 = vld [vmem:[#allocation7 + $0x114] ss:$8 sps:$4 sm:$0xff]  }
 0x486   : > { %v2260_v42 = vsub.f32 %v2256_v37, %v2258_v34  ;;  %v2267_v47 = vmul.f32 %v2259_v35, %v2259_v35  ;;  %v2299_v31 = vpack.c.bf16 %v5037_v11, %v5031_v4  ;;  %v2302_v34 = vpack.c.bf16 %v5033_v9, %v5027_v2  ;;  %v4365_v37 = vld [vmem:[#allocation7 + $0x124] ss:$8 sps:$4 sm:$0xff]  }
 0x487   : > { %v2261_v43 = vmul.f32 %v2247_v38, %v2247_v38  ;;  %v2263_v44 = vmul.f32 %v2253_v39, %v2253_v39  ;;  %v2248_v45 = vsub.f32 %v2244_v40, %v2246_v36  ;;  %v2254_v46 = vsub.f32 %v2250_v24, %v2252_v41  ;;  %v4360_v36 = vld [vmem:[#allocation7 + $0x110] ss:$8 sps:$4 sm:$0xff]   ;;  %v4369_v40 = vld [vmem:[#allocation7 + $0x140] ss:$8 sps:$4 sm:$0xff]   ;;  %v4377_v41 = vld [vmem:[#allocation7 + $0x164] ss:$8 sps:$4 sm:$0xff]  }
 0x488   : > { %v2268_v52 = vmul.f32 %v2260_v42, %v2260_v42 }
 0x489   : > { %v2265_v48 = vadd.f32 %v2263_v44, %v2261_v43  ;;  %v2262_v49 = vmul.f32 %v2248_v45, %v2248_v45  ;;  %v2264_v50 = vmul.f32 %v2254_v46, %v2254_v46  ;;  %v4380_v43 = vld [vmem:[#allocation7 + $0x174] ss:$8 sps:$4 sm:$0xff]   ;;  %v4378_v44 = vld [vmem:[#allocation7 + $0x170] ss:$8 sps:$4 sm:$0xff]  }
 0x48b   : > { %v2269_v51 = vadd.f32 %v2267_v47, %v2265_v48  ;;  %v2266_v53 = vadd.f32 %v2264_v50, %v2262_v49  ;;  %v4386_v47 = vld [vmem:[#allocation7 + $0x194] ss:$8 sps:$4 sm:$0xff]   ;;  %v4384_v48 = vld [vmem:[#allocation7 + $0x190] ss:$8 sps:$4 sm:$0xff]   ;;  %v4389_v49 = vld [vmem:[#allocation7 + $0x1a4] ss:$8 sps:$4 sm:$0xff]  }
 0x48c   : > { %v4387_v50 = vld [vmem:[#allocation7 + $0x1a0] ss:$8 sps:$4 sm:$0xff]  }
 0x48d   : > { %v2271_v54 = vmax.f32 %v2269_v51, 1e-16  ;;  %v2270_v6 = vadd.f32 %v2268_v52, %v2266_v53  ;;  %v4392_v51 = vld [vmem:[#allocation7 + $0x1b4] ss:$8 sps:$4 sm:$0xff]   ;;  %v4390_v52 = vld [vmem:[#allocation7 + $0x1b0] ss:$8 sps:$4 sm:$0xff]  }
 0x48e   : > { %v4395_v53 = vld [vmem:[#allocation7 + $0x1c4] ss:$8 sps:$4 sm:$0xff]  }
 0x48f   : > { %4529 = vrsqrt.f32 %v2271_v54  ;;  %v2272_v55 = vmax.f32 %v2270_v6, 1e-16  ;;  %v4393_v54 = vld [vmem:[#allocation7 + $0x1c0] ss:$8 sps:$4 sm:$0xff]   ;;  %v4398_v6 = vld [vmem:[#allocation7 + $0x1d4] ss:$8 sps:$4 sm:$0xff]  }
 0x491   : > { %4531 = vrsqrt.f32 %v2272_v55  ;;  %v4396_v55 = vld [vmem:[#allocation7 + $0x1d0] ss:$8 sps:$4 sm:$0xff]  }
 0x499   : > { %v4530_v56 = vpop.eup %4529 }
 0x49a   : > { %v5055_v21 = vmul.f32 %v4530_v56, %v2247_v38  ;;  %v5057_v57 = vmul.f32 %v4530_v56, %v2253_v39  ;;  %v5059_v8 = vmul.f32 %v4530_v56, %v2259_v35  ;;  %v4363_v38 = vld [vmem:[#allocation7 + $0x120] ss:$8 sps:$4 sm:$0xff]   ;;  %v4368_v39 = vld [vmem:[#allocation7 + $0x134] ss:$8 sps:$4 sm:$0xff]   ;;  %v4401_v56 = vld [vmem:[#allocation7 + $0x1e4] ss:$8 sps:$4 sm:$0xff]  }
 0x49b   : > { %v4532_v58 = vpop.eup %4531 }
 0x49c   : > { %v2289_v59 = vmul.f32 %v5055_v21, %v5029_v3  ;;  %v5063_v60 = vmul.f32 %v4532_v58, %v2248_v45  ;;  %v5065_v61 = vmul.f32 %v4532_v58, %v2254_v46  ;;  %v5067_v62 = vmul.f32 %v4532_v58, %v2260_v42  ;;  %v4375_v42 = vld [vmem:[#allocation7 + $0x160] ss:$8 sps:$4 sm:$0xff]   ;;  %v4383_v45 = vld [vmem:[#allocation7 + $0x184] ss:$8 sps:$4 sm:$0xff]  }
 0x49d   : > { %v2281_v63 = vmul.f32 %v5057_v57, %v5029_v3  ;;  %v2283_v1 = vmul.f32 %v5059_v8, %v5027_v2  ;;  %v2287_v7 = vmul.f32 %v5059_v8, %v5031_v4  ;;  %v2293_v12 = vmul.f32 %v5055_v21, %v5027_v2  ;;  %v4374_v2 = vld [vmem:[#allocation7 + $0x154] ss:$8 sps:$4 sm:$0xff]   ;;  %v4381_v46 = vld [vmem:[#allocation7 + $0x180] ss:$8 sps:$4 sm:$0xff]  }
 0x49e   : > { %v2290_v13 = vmul.f32 %v5063_v60, %v5035_v10  ;;  %v2282_v14 = vmul.f32 %v5065_v61, %v5035_v10  ;;  %v2284_v15 = vmul.f32 %v5067_v62, %v5033_v9  ;;  %v2301_v16 = vpack.c.bf16 %v5063_v60, %v5055_v21  ;;  %v4399_v58 = vld [vmem:[#allocation7 + $0x1e0] ss:$8 sps:$4 sm:$0xff]   ;;  %v4422_v21 = vld [vmem:[#allocation7 + $0x254] ss:$8 sps:$4 sm:$0xff]  }
 0x49f   : > { %v2285_v17 = vsub.f32 %v2281_v63, %v2283_v1  ;;  %v2304_v18 = vpack.c.bf16 %v5065_v61, %v5057_v57  ;;  %v2288_v19 = vmul.f32 %v5067_v62, %v5037_v11  ;;  %v2291_v20 = vsub.f32 %v2287_v7, %v2289_v59  ;;  %v4404_v59 = vld [vmem:[#allocation7 + $0x1f4] ss:$8 sps:$4 sm:$0xff]   ;;  %v4402_v63 = vld [vmem:[#allocation7 + $0x1f0] ss:$8 sps:$4 sm:$0xff]   ;;  %v4407_v1 = vld [vmem:[#allocation7 + $0x204] ss:$8 sps:$4 sm:$0xff]  }
 0x4a0   : > { %v2286_v22 = vsub.f32 %v2282_v14, %v2284_v15  ;;  %v2294_v23 = vmul.f32 %v5063_v60, %v5033_v9  ;;  %v2295_v25 = vmul.f32 %v5057_v57, %v5031_v4  ;;  %v2296_v26 = vmul.f32 %v5065_v61, %v5037_v11  ;;  %v4366_v4 = vld [vmem:[#allocation7 + $0x130] ss:$8 sps:$4 sm:$0xff]   ;;  %v4371_v11 = vld [vmem:[#allocation7 + $0x144] ss:$8 sps:$4 sm:$0xff]   ;;  %v4405_v7 = vld [vmem:[#allocation7 + $0x200] ss:$8 sps:$4 sm:$0xff]  }
 0x4a1   : > { %v2292_v27 = vsub.f32 %v2288_v19, %v2290_v13  ;;  %v2307_v28 = vpack.c.bf16 %v5067_v62, %v5059_v8  ;;  %v4372_v9 = vld [vmem:[#allocation7 + $0x150] ss:$8 sps:$4 sm:$0xff]   ;;  %v4413_v14 = vld [vmem:[#allocation7 + $0x224] ss:$8 sps:$4 sm:$0xff]   ;;  %v4411_v15 = vld [vmem:[#allocation7 + $0x220] ss:$8 sps:$4 sm:$0xff]  }
 0x4a2   : > { %v2300_v29 = vpack.c.bf16 %v2286_v22, %v2285_v17  ;;  %v2297_v5 = vsub.f32 %v2293_v12, %v2295_v25  ;;  %v2298_v24 = vsub.f32 %v2294_v23, %v2296_v26  ;;  %v4410_v12 = vld [vmem:[#allocation7 + $0x214] ss:$8 sps:$4 sm:$0xff]   ;;  %v4408_v13 = vld [vmem:[#allocation7 + $0x210] ss:$8 sps:$4 sm:$0xff]   ;;  %v4417_v22 = vld [vmem:[#allocation7 + $0x240] ss:$8 sps:$4 sm:$0xff]  }
 0x4a3   : > { %v5099_v33 = vpack.c.bf16 %v2292_v27, %v2291_v20  ;;  %v4416_v17 = vld [vmem:[#allocation7 + $0x234] ss:$8 sps:$4 sm:$0xff]   ;;  %v4414_v19 = vld [vmem:[#allocation7 + $0x230] ss:$8 sps:$4 sm:$0xff]   ;;  %v4419_v20 = vld [vmem:[#allocation7 + $0x244] ss:$8 sps:$4 sm:$0xff]  }
 0x4a4   : > { %3204 = vmatprep.mubr.bf16.mxu0 %v2300_v29  ;;  %v5103_v35 = vpack.c.bf16 %v2298_v24, %v2297_v5  ;;  %v4420_v60 = vld [vmem:[#allocation7 + $0x250] ss:$8 sps:$4 sm:$0xff]   ;;  %v4425_v57 = vld [vmem:[#allocation7 + $0x264] ss:$8 sps:$4 sm:$0xff]   ;;  %v4423_v61 = vld [vmem:[#allocation7 + $0x260] ss:$8 sps:$4 sm:$0xff]  }
 0x4a5   : > { %3205 = vmatmul.mubr.bf16.vlgmr.msra.gmra.mrb[8].mxu0 %v2299_v31  ;;  %v4431_v23 = vld [vmem:[#allocation7 + $0x284] ss:$8 sps:$4 sm:$0xff]   ;;  %v4429_v25 = vld [vmem:[#allocation7 + $0x280] ss:$8 sps:$4 sm:$0xff]   ;;  %v4434_v26 = vld [vmem:[#allocation7 + $0x294] ss:$8 sps:$4 sm:$0xff]  }
 0x4a6   : > { %3216 = vmatpush1.bf16.msra.mxu0 %v4357_v30  ;;  %3247 = vmatprep.mubr.bf16.mxu0 %v2302_v34  ;;  %v4432_v27 = vld [vmem:[#allocation7 + $0x290] ss:$8 sps:$4 sm:$0xff]   ;;  %v4437_v29 = vld [vmem:[#allocation7 + $0x2a4] ss:$8 sps:$4 sm:$0xff]   ;;  %v4435_v30 = vld [vmem:[#allocation7 + $0x2a0] ss:$8 sps:$4 sm:$0xff]  }
 0x4a7   : > { %3217 = vmatprep.subr.bf16.mxu0 %v4362_v32  ;;  %v4440_v5 = vld [vmem:[#allocation7 + $0x2b4] ss:$8 sps:$4 sm:$0xff]   ;;  %v4438_v24 = vld [vmem:[#allocation7 + $0x2b0] ss:$8 sps:$4 sm:$0xff]   ;;  %v4443_v31 = vld [vmem:[#allocation7 + $0x2c4] ss:$8 sps:$4 sm:$0xff]  }
 0x4a8   : > { %v4441_v32 = vld [vmem:[#allocation7 + $0x2c0] ss:$8 sps:$4 sm:$0xff]   ;;  %v4446_v34 = vld [vmem:[#allocation7 + $0x2d4] ss:$8 sps:$4 sm:$0xff]  }
 0x4aa   : > { %3218 = vmatpush1.bf16.msra.mxu0 %v4360_v36  ;;  %v4444_v36 = vld [vmem:[#allocation7 + $0x2d0] ss:$8 sps:$4 sm:$0xff]  }
 0x4ab   : > { %3219 = vmatprep.subr.bf16.mxu0 %v4365_v37  ;;  %v4449_v37 = vld [vmem:[#allocation7 + $0x2e4] ss:$8 sps:$4 sm:$0xff]  }
 0x4ae   : > { %3220 = vmatpush1.bf16.msra.mxu0 %v4363_v38  ;;  %v4447_v38 = vld [vmem:[#allocation7 + $0x2e0] ss:$8 sps:$4 sm:$0xff]  }
 0x4af   : > { %3221 = vmatprep.subr.bf16.mxu0 %v4368_v39  ;;  %v4452_v39 = vld [vmem:[#allocation7 + $0x2f4] ss:$8 sps:$4 sm:$0xff]  }
 0x4b2   : > { %3222 = vmatpush1.bf16.msra.mxu0 %v4366_v4  ;;  %v4450_v4 = vld [vmem:[#allocation7 + $0x2f0] ss:$8 sps:$4 sm:$0xff]  }
 0x4b3   : > { %3223 = vmatprep.subr.bf16.mxu0 %v4371_v11  ;;  %v4455_v11 = vld [vmem:[#allocation7 + $0x304] ss:$8 sps:$4 sm:$0xff]  }
 0x4b6   : > { %3224 = vmatpush1.bf16.msra.mxu0 %v4369_v40  ;;  %v4453_v40 = vld [vmem:[#allocation7 + $0x300] ss:$8 sps:$4 sm:$0xff]  }
 0x4b7   : > { %3225 = vmatprep.subr.bf16.mxu0 %v4374_v2  ;;  %v4458_v2 = vld [vmem:[#allocation7 + $0x314] ss:$8 sps:$4 sm:$0xff]  }
 0x4ba   : > { %3226 = vmatpush1.bf16.msra.mxu0 %v4372_v9  ;;  %v4456_v9 = vld [vmem:[#allocation7 + $0x310] ss:$8 sps:$4 sm:$0xff]  }
 0x4bb   : > { %3227 = vmatprep.subr.bf16.mxu0 %v4377_v41  ;;  %v4461_v41 = vld [vmem:[#allocation7 + $0x324] ss:$8 sps:$4 sm:$0xff]  }
 0x4be   : > { %3228 = vmatpush1.bf16.msra.mxu0 %v4375_v42  ;;  %v4459_v42 = vld [vmem:[#allocation7 + $0x320] ss:$8 sps:$4 sm:$0xff]  }
 0x4bf   : > { %3229 = vmatprep.subr.bf16.mxu0 %v4380_v43  ;;  %v4464_v43 = vld [vmem:[#allocation7 + $0x334] ss:$8 sps:$4 sm:$0xff]  }
 0x4c2   : > { %3230 = vmatpush1.bf16.msra.mxu0 %v4378_v44  ;;  %v4462_v44 = vld [vmem:[#allocation7 + $0x330] ss:$8 sps:$4 sm:$0xff]  }
 0x4c3   : > { %3231 = vmatprep.subr.bf16.mxu0 %v4383_v45  ;;  %v4467_v45 = vld [vmem:[#allocation7 + $0x344] ss:$8 sps:$4 sm:$0xff]  }
 0x4c6   : > { %3232 = vmatpush1.bf16.msra.mxu0 %v4381_v46  ;;  %v4465_v46 = vld [vmem:[#allocation7 + $0x340] ss:$8 sps:$4 sm:$0xff]  }
 0x4c7   : > { %3233 = vmatprep.subr.bf16.mxu0 %v4386_v47  ;;  %v4470_v47 = vld [vmem:[#allocation7 + $0x354] ss:$8 sps:$4 sm:$0xff]  }
 0x4ca   : > { %3234 = vmatpush1.bf16.msra.mxu0 %v4384_v48  ;;  %v4473_v48 = vld [vmem:[#allocation7 + $0x364] ss:$8 sps:$4 sm:$0xff]  }
 0x4cb   : > { %3235 = vmatprep.subr.bf16.mxu0 %v4389_v49  ;;  %v4476_v49 = vld [vmem:[#allocation7 + $0x374] ss:$8 sps:$4 sm:$0xff]  }
 0x4ce   : > { %3236 = vmatpush1.bf16.msra.mxu0 %v4387_v50  ;;  %v4474_v50 = vld [vmem:[#allocation7 + $0x370] ss:$8 sps:$4 sm:$0xff]  }
 0x4cf   : > { %3237 = vmatprep.subr.bf16.mxu0 %v4392_v51  ;;  %v4479_v51 = vld [vmem:[#allocation7 + $0x384] ss:$8 sps:$4 sm:$0xff]  }
 0x4d2   : > { %3238 = vmatpush1.bf16.msra.mxu0 %v4390_v52  ;;  %v4477_v52 = vld [vmem:[#allocation7 + $0x380] ss:$8 sps:$4 sm:$0xff]  }
 0x4d3   : > { %3239 = vmatprep.subr.bf16.mxu0 %v4395_v53  ;;  %v4482_v53 = vld [vmem:[#allocation7 + $0x394] ss:$8 sps:$4 sm:$0xff]  }
 0x4d6   : > { %3240 = vmatpush1.bf16.msra.mxu0 %v4393_v54  ;;  %v4480_v54 = vld [vmem:[#allocation7 + $0x390] ss:$8 sps:$4 sm:$0xff]  }
 0x4d7   : > { %3241 = vmatprep.subr.bf16.mxu0 %v4398_v6  ;;  %v4485_v6 = vld [vmem:[#allocation7 + $0x3a4] ss:$8 sps:$4 sm:$0xff]  }
 0x4da   : > { %3242 = vmatpush1.bf16.msra.mxu0 %v4396_v55  ;;  %v4483_v55 = vld [vmem:[#allocation7 + $0x3a0] ss:$8 sps:$4 sm:$0xff]  }
 0x4db   : > { %3243 = vmatprep.subr.bf16.mxu0 %v4401_v56  ;;  %v4488_v56 = vld [vmem:[#allocation7 + $0x3b4] ss:$8 sps:$4 sm:$0xff]  }
 0x4de   : > { %3244 = vmatpush1.bf16.msra.mxu0 %v4399_v58  ;;  %v4486_v58 = vld [vmem:[#allocation7 + $0x3b0] ss:$8 sps:$4 sm:$0xff]  }
 0x4df   : > { %3245 = vmatprep.subr.bf16.mxu0 %v4404_v59  ;;  %v4491_v59 = vld [vmem:[#allocation7 + $0x3c4] ss:$8 sps:$4 sm:$0xff]  }
 0x4e2   : > { %3246 = vmatpush1.bf16.msra.mxu0 %v4402_v63  ;;  %v4489_v63 = vld [vmem:[#allocation7 + $0x3c0] ss:$8 sps:$4 sm:$0xff]  }
 0x4e3   : > { %3258 = vmatprep.subr.bf16.mxu0 %v4407_v1  ;;  %v4494_v1 = vld [vmem:[#allocation7 + $0x3d4] ss:$8 sps:$4 sm:$0xff]  }
 0x4e5   : > { %3248 = vmatmul.mubr.bf16.vlgmr.msra.gmra.mrb[8].mxu0 %v2301_v16  ;;  %v4428_v16 = vld [vmem:[#allocation7 + $0x274] ss:$8 sps:$4 sm:$0xff]  }
 0x4e6   : > { %3259 = vmatpush1.bf16.msra.mxu0 %v4405_v7  ;;  %3290 = vmatprep.mubr.bf16.mxu0 %v2304_v18  ;;  %v4426_v18 = vld [vmem:[#allocation7 + $0x270] ss:$8 sps:$4 sm:$0xff]  }
 0x4e7   : > { %3260 = vmatprep.subr.bf16.mxu0 %v4410_v12  ;;  %v4492_v7 = vld [vmem:[#allocation7 + $0x3d0] ss:$8 sps:$4 sm:$0xff]   ;;  %v4497_v12 = vld [vmem:[#allocation7 + $0x3e4] ss:$8 sps:$4 sm:$0xff]  }
 0x4ea   : > { %3261 = vmatpush1.bf16.msra.mxu0 %v4408_v13  ;;  %v4495_v13 = vld [vmem:[#allocation7 + $0x3e0] ss:$8 sps:$4 sm:$0xff]  }
 0x4eb   : > { %3262 = vmatprep.subr.bf16.mxu0 %v4413_v14  ;;  %v4500_v14 = vld [vmem:[#allocation7 + $0x3f4] ss:$8 sps:$4 sm:$0xff]  }
 0x4ee   : > { %3263 = vmatpush1.bf16.msra.mxu0 %v4411_v15  ;;  %v4498_v15 = vld [vmem:[#allocation7 + $0x3f0] ss:$8 sps:$4 sm:$0xff]  }
 0x4ef   : > { %3264 = vmatprep.subr.bf16.mxu0 %v4416_v17  ;;  %v4503_v17 = vld [vmem:[#allocation7 + $0x404] ss:$8 sps:$4 sm:$0xff]  }
 0x4f2   : > { %3265 = vmatpush1.bf16.msra.mxu0 %v4414_v19  ;;  %v4501_v19 = vld [vmem:[#allocation7 + $0x400] ss:$8 sps:$4 sm:$0xff]  }
 0x4f3   : > { %3266 = vmatprep.subr.bf16.mxu0 %v4419_v20  ;;  %v2305_v20 = vpack.c.bf16 %v5035_v10, %v5029_v3  ;;  %v4518_v3 = vld [vmem:[#allocation7 + $0x454] ss:$8 sps:$4 sm:$0xff]   ;;  %v4516_v10 = vld [vmem:[#allocation7 + $0x450] ss:$8 sps:$4 sm:$0xff]  }
 0x4f6   : > { %3267 = vmatpush1.bf16.msra.mxu0 %v4417_v22  ;;  %v4506_v22 = vld [vmem:[#allocation7 + $0x414] ss:$8 sps:$4 sm:$0xff]  }
 0x4f7   : > { %3268 = vmatprep.subr.bf16.mxu0 %v4422_v21  ;;  %v4504_v21 = vld [vmem:[#allocation7 + $0x410] ss:$8 sps:$4 sm:$0xff]  }
 0x4fa   : > { %3269 = vmatpush1.bf16.msra.mxu0 %v4420_v60  ;;  %v4509_v60 = vld [vmem:[#allocation7 + $0x424] ss:$8 sps:$4 sm:$0xff]  }
 0x4fb   : > { %3270 = vmatprep.subr.bf16.mxu0 %v4425_v57  ;;  %v4507_v57 = vld [vmem:[#allocation7 + $0x420] ss:$8 sps:$4 sm:$0xff]  }
 0x4fe   : > { %3271 = vmatpush1.bf16.msra.mxu0 %v4423_v61  ;;  %v4512_v61 = vld [vmem:[#allocation7 + $0x434] ss:$8 sps:$4 sm:$0xff]  }
 0x4ff   : > { %3272 = vmatprep.subr.bf16.mxu0 %v4428_v16  ;;  %v4510_v16 = vld [vmem:[#allocation7 + $0x430] ss:$8 sps:$4 sm:$0xff]  }
 0x502   : > { %3273 = vmatpush1.bf16.msra.mxu0 %v4426_v18  ;;  %v4515_v18 = vld [vmem:[#allocation7 + $0x444] ss:$8 sps:$4 sm:$0xff]  }
 0x503   : > { %3274 = vmatprep.subr.bf16.mxu0 %v4431_v23  ;;  %v4513_v23 = vld [vmem:[#allocation7 + $0x440] ss:$8 sps:$4 sm:$0xff]  }
 0x506   : > { %3275 = vmatpush1.bf16.msra.mxu0 %v4429_v25  ;;  %v4521_v25 = vld [vmem:[#allocation7 + $0x464] ss:$8 sps:$4 sm:$0xff]  }
 0x507   : > { %3276 = vmatprep.subr.bf16.mxu0 %v4434_v26  ;;  %v4524_v26 = vld [vmem:[#allocation7 + $0x474] ss:$8 sps:$4 sm:$0xff]  }
 0x50a   : > { %3277 = vmatpush1.bf16.msra.mxu0 %v4432_v27  ;;  %v4522_v27 = vld [vmem:[#allocation7 + $0x470] ss:$8 sps:$4 sm:$0xff]  }
 0x50b   : > { %3278 = vmatprep.subr.bf16.mxu0 %v4437_v29 }
 0x50e   : > { %3279 = vmatpush1.bf16.msra.mxu0 %v4435_v30 }
 0x50f   : > { %3280 = vmatprep.subr.bf16.mxu0 %v4440_v5 }
 0x512   : > { %3281 = vmatpush1.bf16.msra.mxu0 %v4438_v24 }
 0x513   : > { %3282 = vmatprep.subr.bf16.mxu0 %v4443_v31 }
 0x516   : > { %3283 = vmatpush1.bf16.msra.mxu0 %v4441_v32 }
 0x517   : > { %3284 = vmatprep.subr.bf16.mxu0 %v4446_v34 }
 0x51a   : > { %3285 = vmatpush1.bf16.msra.mxu0 %v4444_v36 }
 0x51b   : > { %3286 = vmatprep.subr.bf16.mxu0 %v4449_v37 }
 0x51e   : > { %3287 = vmatpush1.bf16.msra.mxu0 %v4447_v38 }
 0x51f   : > { %3288 = vmatprep.subr.bf16.mxu0 %v4452_v39 }
 0x522   : > { %3289 = vmatpush1.bf16.msra.mxu0 %v4450_v4 }
 0x523   : > { %3301 = vmatprep.subr.bf16.mxu0 %v4455_v11 }
 0x525   : > { %3291 = vmatmul.mubr.bf16.vlgmr.msra.gmra.mrb[8].mxu0 %v5099_v33  ;;  %v4468_v33 = vld [vmem:[#allocation7 + $0x350] ss:$8 sps:$4 sm:$0xff]  }
 0x526   : > { %3302 = vmatpush1.bf16.msra.mxu0 %v4453_v40  ;;  %3333 = vmatprep.mubr.bf16.mxu0 %v5103_v35  ;;  %v4471_v35 = vld [vmem:[#allocation7 + $0x360] ss:$8 sps:$4 sm:$0xff]  }
 0x527   : > { %3303 = vmatprep.subr.bf16.mxu0 %v4458_v2 }
 0x52a   : > { %3304 = vmatpush1.bf16.msra.mxu0 %v4456_v9 }
 0x52b   : > { %3305 = vmatprep.subr.bf16.mxu0 %v4461_v41 }
 0x52e   : > { %3306 = vmatpush1.bf16.msra.mxu0 %v4459_v42 }
 0x52f   : > { %3307 = vmatprep.subr.bf16.mxu0 %v4464_v43 }
 0x532   : > { %3308 = vmatpush1.bf16.msra.mxu0 %v4462_v44 }
 0x533   : > { %3309 = vmatprep.subr.bf16.mxu0 %v4467_v45 }
 0x536   : > { %3310 = vmatpush1.bf16.msra.mxu0 %v4465_v46 }
 0x537   : > { %3311 = vmatprep.subr.bf16.mxu0 %v4470_v47 }
 0x53a   : > { %3312 = vmatpush1.bf16.msra.mxu0 %v4468_v33 }
 0x53b   : > { %3313 = vmatprep.subr.bf16.mxu0 %v4473_v48 }
 0x53e   : > { %3314 = vmatpush1.bf16.msra.mxu0 %v4471_v35 }
 0x53f   : > { %3315 = vmatprep.subr.bf16.mxu0 %v4476_v49 }
 0x542   : > { %3316 = vmatpush1.bf16.msra.mxu0 %v4474_v50 }
 0x543   : > { %3317 = vmatprep.subr.bf16.mxu0 %v4479_v51 }
 0x546   : > { %3318 = vmatpush1.bf16.msra.mxu0 %v4477_v52 }
 0x547   : > { %3319 = vmatprep.subr.bf16.mxu0 %v4482_v53 }
 0x54a   : > { %3320 = vmatpush1.bf16.msra.mxu0 %v4480_v54 }
 0x54b   : > { %3321 = vmatprep.subr.bf16.mxu0 %v4485_v6 }
 0x54e   : > { %3322 = vmatpush1.bf16.msra.mxu0 %v4483_v55 }
 0x54f   : > { %3323 = vmatprep.subr.bf16.mxu0 %v4488_v56 }
 0x552   : > { %3324 = vmatpush1.bf16.msra.mxu0 %v4486_v58 }
 0x553   : > { %3325 = vmatprep.subr.bf16.mxu0 %v4491_v59 }
 0x556   : > { %3326 = vmatpush1.bf16.msra.mxu0 %v4489_v63 }
 0x557   : > { %3327 = vmatprep.subr.bf16.mxu0 %v4494_v1 }
 0x55a   : > { %3328 = vmatpush1.bf16.msra.mxu0 %v4492_v7 }
 0x55b   : > { %3329 = vmatprep.subr.bf16.mxu0 %v4497_v12 }
 0x55e   : > { %3330 = vmatpush1.bf16.msra.mxu0 %v4495_v13 }
 0x55f   : > { %3331 = vmatprep.subr.bf16.mxu0 %v4500_v14 }
 0x562   : > { %3332 = vmatpush1.bf16.msra.mxu0 %v4498_v15 }
 0x563   : > { %3344 = vmatprep.subr.bf16.mxu0 %v4503_v17 }
 0x565   : > { %3334 = vmatmul.mubr.bf16.vlgmr.msra.gmra.mrb[8].mxu0 %v2305_v20 }
 0x566   : > { %3345 = vmatpush1.bf16.msra.mxu0 %v4501_v19  ;;  %3376 = vmatprep.mubr.bf16.mxu0 %v4673_v0  ;;  %v4519_v0 = vld [vmem:[#allocation7 + $0x460] ss:$8 sps:$4 sm:$0xff]  }
 0x567   : > { %3346 = vmatprep.subr.bf16.mxu0 %v4506_v22 }
 0x56a   : > { %3347 = vmatpush1.bf16.msra.mxu0 %v4504_v21 }
 0x56b   : > { %3348 = vmatprep.subr.bf16.mxu0 %v4509_v60 }
 0x56e   : > { %3349 = vmatpush1.bf16.msra.mxu0 %v4507_v57 }
 0x56f   : > { %3350 = vmatprep.subr.bf16.mxu0 %v4512_v61 }
 0x572   : > { %3351 = vmatpush1.bf16.msra.mxu0 %v4510_v16 }
 0x573   : > { %3352 = vmatprep.subr.bf16.mxu0 %v4515_v18 }
 0x576   : > { %3353 = vmatpush1.bf16.msra.mxu0 %v4513_v23 }
 0x577   : > { %3354 = vmatprep.subr.bf16.mxu0 %v4518_v3 }
 0x57a   : > { %3355 = vmatpush1.bf16.msra.mxu0 %v4516_v10 }
 0x57b   : > { %3356 = vmatprep.subr.bf16.mxu0 %v4521_v25 }
 0x57e   : > { %3357 = vmatpush1.bf16.msra.mxu0 %v4519_v0 }
 0x57f   : > { %3358 = vmatprep.subr.bf16.mxu0 %v4524_v26 }
 0x582   : > { %3359 = vmatpush1.bf16.msra.mxu0 %v4522_v27 }
 0x585   : > { %3377 = vmatmul.mubr.bf16.vlgmr.msra.gmra.mrb[8].mxu0 %v2307_v28 }
 0x658   : > { %v3378_v29 = vpop.f32.mrb[8].mxu0 }
 0x659   : > { %v3380_v30 = vpop.f32.mrb[9].mxu0 }
 0x65a   : > { %v3892_v5 = vpack.c.bf16 %v3380_v30, %v3378_v29  ;;  %v3382_v24 = vpop.f32.mrb[10].mxu0 }
 0x65b   : > { %v3384_v31 = vpop.f32.mrb[11].mxu0 }
 0x65c   : > { %3399 = vst [vmem:[%s422_s30] sm:$0xff] %v3892_v5  ;;  %v3893_v32 = vpack.c.bf16 %v3384_v31, %v3382_v24 }
 0x65e   : > { %3400 = vst [vmem:[%s422_s30 + $0x8] sm:$0xff] %v3893_v32 }
 0x65f PF: > { %s23_s13 = sadd.s32 1, %s4663_s13  }
 0x660   : > { %p20_p3 = scmp.ge.s32.totalorder %s23_s13, 4  }
 0x662   :  { %22 = sbr.rel (!%p20_p3) target bundleno = 3 (0x3), region = 107 }
 0x669   :  { %3425 = vsyncpa [#allocation3], 1 }
 0x66a   :  { %3427 = vsyncpa [#allocation3 + $0x1], 1 }
 0x66b   :  { %3428 = vsyncpa [#allocation5], 1 }
 0x66c   :  { %3429 = vsyncpa [#allocation8], 1 }

</bundles_post_ra>
